<compile_context>
chip_gen: v7x
topology: tpu7x:2x2x1
jax: 0.10.0
libtpu: 0.0.40
codegen_flags: <defaults>
</compile_context>

<pallas_src>
import math
import functools

import jax
import jax.numpy as jnp
from jax.experimental import pallas as pl
from jax.experimental.pallas import tpu as pltpu


# ---------------------------------------------------------------------------
# Helpers
# ---------------------------------------------------------------------------

@functools.lru_cache(maxsize=1)
def _vmem_limit_bytes():
    """Generation-specific scoped-VMEM budget (headroom left for compiler scratch/spill)."""
    mib = 1024 * 1024
    try:
        cap = int(pltpu.get_tpu_info().vmem_capacity_bytes)
    except Exception:
        cap = 64 * mib                       # conservative (v7x-sized) fallback
    # v7x (64 MiB physical) -> ~40 MiB; v5e/v6e (128 MiB) -> 100 MiB.
    return max(32 * mib, min(cap - 24 * mib, 100 * mib))


def _round_up(x, m):
    return ((x + m - 1) // m) * m


def _pick_row_tile(m, candidates=(512, 256, 128)):
    """Pick a row tile and a (possibly padded) row count.

    Never silently collapses a large non-divisible axis into one giant tile: if m is
    large and no candidate tile divides it, it is padded up to a 256 multiple instead.
    Small m (<= largest candidate) uses a single tile, which is fine VMEM-wise.
    """
    for t in candidates:
        if m % t == 0:
            return t, m
    if m <= candidates[0]:
        return m, m
    return 256, _round_up(m, 256)


def _pad_rows(a, m_pad):
    if a.shape[0] == m_pad:
        return a
    return jnp.pad(a, ((0, m_pad - a.shape[0]), (0, 0)))


# ---------------------------------------------------------------------------
# Kernels
# ---------------------------------------------------------------------------

def _attn_block_kernel(x_ref, wqkv_ref, bqkv_ref, wo_ref, bo_ref, g_ref, beta_ref,
                       o_ref, qkv_scr, m_scr, l_scr, acc_scr,
                       *, nhead, hd, tq, eps):
    """Fused attention block for one (batch, q-tile) grid point.

    qt == 0 : project QKV for the whole sequence once into head-major VMEM scratch (bf16).
    every qt: flash-style online softmax over causal KV tiles, then out-projection +
              residual + LayerNorm for the q-tile rows (f32 math, bf16 store).
    """
    qt = pl.program_id(1)
    S = x_ref.shape[0]
    D = nhead * hd

    @pl.when(qt == 0)
    def _():
        # bf16 MXU matmul, f32 accumulate.  1/sqrt(hd) is pre-folded into the Q columns.
        qkv = jnp.dot(x_ref[...], wqkv_ref[...],
                      preferred_element_type=jnp.float32) + bqkv_ref[...]     # [S, 3D] f32
        qkv = qkv.reshape(S, 3 * nhead, hd)
        qkv_scr[...] = jnp.transpose(qkv, (1, 0, 2)).astype(jnp.bfloat16)     # [3H, S, hd]

    q_start = pl.multiple_of(qt * tq, tq)
    q = qkv_scr[0:nhead, pl.ds(q_start, tq), :]                               # [nhead, tq, hd]

    # Online-softmax state for this q-tile.
    m_scr[...] = jnp.full_like(m_scr, -1e30)
    l_scr[...] = jnp.zeros_like(l_scr)
    acc_scr[...] = jnp.zeros_like(acc_scr)

    # Causal attention: only KV tiles 0..qt are visible.
    @pl.loop(0, qt + 1)
    def _(j):
        k_start = pl.multiple_of(j * tq, tq)
        k = qkv_scr[nhead:2 * nhead, pl.ds(k_start, tq), :]                   # [nhead, tq, hd]
        v = qkv_scr[2 * nhead:3 * nhead, pl.ds(k_start, tq), :]
        s = jnp.einsum('hqd,hkd->hqk', q, k,
                       preferred_element_type=jnp.float32)                    # [nhead, tq, tq]
        qpos = q_start + jax.lax.broadcasted_iota(jnp.int32, s.shape, 1)
        kpos = k_start + jax.lax.broadcasted_iota(jnp.int32, s.shape, 2)
        s = jnp.where(kpos <= qpos, s, -1e30)                                 # in-kernel causal mask
        m_prev = m_scr[...]
        m_new = jnp.maximum(m_prev, jnp.max(s, axis=-1, keepdims=True))
        alpha = jnp.exp(m_prev - m_new)
        p = jnp.exp(s - m_new)
        l_scr[...] = alpha * l_scr[...] + jnp.sum(p, axis=-1, keepdims=True)
        acc_scr[...] = alpha * acc_scr[...] + jnp.einsum(
            'hqk,hkd->hqd', p.astype(jnp.bfloat16), v,
            preferred_element_type=jnp.float32)
        m_scr[...] = m_new

    attn = acc_scr[...] * pl.reciprocal(l_scr[...], approx=True)              # [nhead, tq, hd]
    attn = jnp.transpose(attn, (1, 0, 2)).reshape(tq, D).astype(jnp.bfloat16)

    # Output projection + residual + LayerNorm (f32 math), store bf16.
    proj = jnp.dot(attn, wo_ref[...], preferred_element_type=jnp.float32) + bo_ref[...]
    y = x_ref[pl.ds(q_start, tq), :].astype(jnp.float32) + proj
    mu = jnp.mean(y, axis=-1, keepdims=True)
    d = y - mu
    var = jnp.mean(d * d, axis=-1, keepdims=True)
    o_ref[...] = (d * jax.lax.rsqrt(var + eps) * g_ref[...]
                  + beta_ref[...]).astype(o_ref.dtype)


def _ffn_block_kernel(y_ref, w1_ref, b1_ref, w2_ref, b2_ref, g_ref, beta_ref,
                      o_ref, *, eps):
    """Fused: linear1 + ReLU + linear2 + residual + LayerNorm on a [tm, D] row tile."""
    y = y_ref[...]                                                            # [tm, D] bf16
    h = jnp.dot(y, w1_ref[...], preferred_element_type=jnp.float32) + b1_ref[...]
    # Cast immediately after bias+ReLU to bound the [tm, H] f32 live intermediate.
    h = jnp.maximum(h, 0.0).astype(jnp.bfloat16)
    ff = jnp.dot(h, w2_ref[...], preferred_element_type=jnp.float32) + b2_ref[...]
    z = y.astype(jnp.float32) + ff
    mu = jnp.mean(z, axis=-1, keepdims=True)
    d = z - mu
    var = jnp.mean(d * d, axis=-1, keepdims=True)
    o_ref[...] = (d * jax.lax.rsqrt(var + eps) * g_ref[...]
                  + beta_ref[...]).astype(o_ref.dtype)


def _linear_kernel(x_ref, w_ref, b_ref, o_ref):
    """Decoder projection tile: full-K matmul + bias (no reduction axis / accumulator)."""
    o_ref[...] = (jnp.dot(x_ref[...], w_ref[...], preferred_element_type=jnp.float32)
                  + b_ref[...]).astype(o_ref.dtype)


# ---------------------------------------------------------------------------
# pallas_call wrappers
# ---------------------------------------------------------------------------

def attention_block(x, p, nhead):
    """x: [B, S, D] bf16 -> LayerNorm(x + causal_MHA(x)): [B, S, D] bf16."""
    B, S, D = x.shape
    hd = D // nhead
    tq = S
    for cand in (256, 128):
        if S % cand == 0:
            tq = cand
            break
    grid = (B, S // tq)
    kernel = functools.partial(_attn_block_kernel, nhead=nhead, hd=hd, tq=tq, eps=1e-5)
    return pl.pallas_call(
        kernel,
        out_shape=jax.ShapeDtypeStruct((B, S, D), jnp.bfloat16),
        grid_spec=pltpu.PrefetchScalarGridSpec(
            num_scalar_prefetch=0,
            grid=grid,
            in_specs=[
                pl.BlockSpec((None, S, D), lambda b, qt: (b, 0, 0)),     # full seq for KV proj
                # Grid-invariant weights (single block, re-used across all grid steps).
                # TODO(synk): on v7x, pipeline_mode=pl.Buffered(1) here would halve the
                # double-buffered weight VMEM once very large D/H configs are used.
                pl.BlockSpec((D, 3 * D), lambda b, qt: (0, 0)),
                pl.BlockSpec((1, 3 * D), lambda b, qt: (0, 0)),
                pl.BlockSpec((D, D), lambda b, qt: (0, 0)),
                pl.BlockSpec((1, D), lambda b, qt: (0, 0)),
                pl.BlockSpec((1, D), lambda b, qt: (0, 0)),
                pl.BlockSpec((1, D), lambda b, qt: (0, 0)),
            ],
            out_specs=pl.BlockSpec((None, tq, D), lambda b, qt: (b, qt, 0)),
            scratch_shapes=[
                pltpu.VMEM((3 * nhead, S, hd), jnp.bfloat16),   # head-major QKV scratch
                pltpu.VMEM((nhead, tq, 1), jnp.float32),        # m (online-softmax max)
                pltpu.VMEM((nhead, tq, 1), jnp.float32),        # l (online-softmax denom)
                pltpu.VMEM((nhead, tq, hd), jnp.float32),       # acc
            ]),
        compiler_params=pltpu.CompilerParams(
            dimension_semantics=("parallel", "arbitrary"),
            vmem_limit_bytes=_vmem_limit_bytes()),
    )(x, p['in_proj_w'], p['in_proj_b'], p['out_proj_w'], p['out_proj_b'],
      p['ln1_g'], p['ln1_b'])


def ffn_block(y, p):
    """y: [M, D] bf16 -> LayerNorm(y + W2 relu(W1 y + b1) + b2): [M, D] bf16."""
    M, D = y.shape
    H = p['w1'].shape[1]
    tm, Mp = _pick_row_tile(M)
    yp = _pad_rows(y, Mp)
    out = pl.pallas_call(
        functools.partial(_ffn_block_kernel, eps=1e-5),
        out_shape=jax.ShapeDtypeStruct((Mp, D), jnp.bfloat16),
        grid_spec=pltpu.PrefetchScalarGridSpec(
            num_scalar_prefetch=0,
            grid=(Mp // tm,),
            in_specs=[
                pl.BlockSpec((tm, D), lambda i: (i, 0)),
                pl.BlockSpec((D, H), lambda i: (0, 0)),
                pl.BlockSpec((1, H), lambda i: (0, 0)),
                pl.BlockSpec((H, D), lambda i: (0, 0)),
                pl.BlockSpec((1, D), lambda i: (0, 0)),
                pl.BlockSpec((1, D), lambda i: (0, 0)),
                pl.BlockSpec((1, D), lambda i: (0, 0)),
            ],
            out_specs=pl.BlockSpec((tm, D), lambda i: (i, 0))),
        compiler_params=pltpu.CompilerParams(
            dimension_semantics=("parallel",),
            vmem_limit_bytes=_vmem_limit_bytes()),
    )(yp, p['w1'], p['b1'], p['w2'], p['b2'], p['ln2_g'], p['ln2_b'])
    return out[:M] if Mp != M else out


def linear_full_k(x, w, b):
    """Decoder projection. x: [M, K] bf16, w: [K, N] bf16, b: [1, N] f32 -> [M, N] f32.

    Full-K tiles (no reduction grid axis, no accumulator); both grid axes parallel.
    """
    M, K = x.shape
    N = w.shape[1]
    tm, Mp = _pick_row_tile(M)
    tn, Np = _pick_row_tile(N, candidates=(1024, 512, 256, 128))
    xp = _pad_rows(x, Mp)
    wp = w if Np == N else jnp.pad(w, ((0, 0), (0, Np - N)))
    bp = b if Np == N else jnp.pad(b, ((0, 0), (0, Np - N)))
    out = pl.pallas_call(
        _linear_kernel,
        out_shape=jax.ShapeDtypeStruct((Mp, Np), jnp.float32),
        grid_spec=pltpu.PrefetchScalarGridSpec(
            num_scalar_prefetch=0,
            grid=(Mp // tm, Np // tn),
            in_specs=[
                pl.BlockSpec((tm, K), lambda i, j: (i, 0)),
                pl.BlockSpec((K, tn), lambda i, j: (0, j)),
                pl.BlockSpec((1, tn), lambda i, j: (0, j)),
            ],
            out_specs=pl.BlockSpec((tm, tn), lambda i, j: (i, j))),
        compiler_params=pltpu.CompilerParams(
            dimension_semantics=("parallel", "parallel"),
            vmem_limit_bytes=_vmem_limit_bytes()),
    )(xp, wp, bp)
    return out[:M, :N]


# ---------------------------------------------------------------------------
# Model forward
# ---------------------------------------------------------------------------

def transformer_forward(src, params):
    """src: int32 [S, B] token ids. Returns float32 [S, B, ntoken] logits.

    The standard causal (square-subsequent) src_mask is generated inside the attention
    kernel. TODO(synk): arbitrary user-supplied additive src_mask tensors are not plumbed.
    TODO(synk): dropout (p=0.5 / 0.1) omitted - inference-mode identity.
    """
    S, B = src.shape
    D = params['d_model']
    nhead = params['nhead']
    ntoken = params['ntoken']

    # Embedding gather + sqrt(D) scale + positional encoding stay in XLA glue so they fuse
    # with the gather (no standalone elementwise kernel / extra HBM round trip).
    emb = jnp.take(params['emb'], src.T, axis=0)                            # [B, S, D] f32
    x = (emb * math.sqrt(D) + params['pe'][:S][None]).astype(jnp.bfloat16)  # bf16 stream

    for lp in params['layers']:
        x = attention_block(x, lp, nhead)                                   # attn + add&norm
        x = ffn_block(x.reshape(B * S, D), lp).reshape(B, S, D)             # ffn + add&norm

    # Decoder projection over a lane-dense (128-padded) vocab; padding sliced off after.
    logits = linear_full_k(x.reshape(B * S, D), params['dec_w'], params['dec_b'])
    logits = logits[:, :ntoken].reshape(B, S, ntoken)
    return jnp.transpose(logits, (1, 0, 2))                                 # [S, B, ntoken]


# ---------------------------------------------------------------------------
# Deterministic parameter init (synthetic; mirrors module shapes)
# ---------------------------------------------------------------------------

def make_positional_encoding(d_model, max_len=512):
    position = jnp.arange(max_len, dtype=jnp.float32)[:, None]
    div_term = jnp.exp(jnp.arange(0, d_model, 2, dtype=jnp.float32)
                       * (-math.log(10000.0) / d_model))
    pe = jnp.zeros((max_len, d_model), dtype=jnp.float32)
    pe = pe.at[:, 0::2].set(jnp.sin(position * div_term))
    pe = pe.at[:, 1::2].set(jnp.cos(position * div_term))
    return pe


def init_layer_params(key, d_model, d_hid, nhead):
    k = jax.random.split(key, 4)
    s1 = 1.0 / math.sqrt(d_model)
    s2 = 1.0 / math.sqrt(d_hid)
    f32, bf16 = jnp.float32, jnp.bfloat16
    hd = d_model // nhead

    # in_proj stored pre-transposed [D, 3D] (columns ordered q|k|v, torch in_proj layout;
    # within each block columns are head-major). 1/sqrt(head_dim) folded into Q columns.
    in_proj_w = jax.random.uniform(k[0], (d_model, 3 * d_model), f32, -s1, s1)
    in_proj_b = jnp.zeros((3 * d_model,), f32)
    scale = 1.0 / math.sqrt(hd)
    in_proj_w = in_proj_w.at[:, :d_model].multiply(scale)
    in_proj_b = in_proj_b.at[:d_model].multiply(scale)

    return {
        'in_proj_w': in_proj_w.astype(bf16),
        'in_proj_b': in_proj_b.reshape(1, 3 * d_model),
        'out_proj_w': jax.random.uniform(k[1], (d_model, d_model), f32, -s1, s1).astype(bf16),
        'out_proj_b': jnp.zeros((1, d_model), f32),
        'w1': jax.random.uniform(k[2], (d_model, d_hid), f32, -s1, s1).astype(bf16),
        'b1': jnp.zeros((1, d_hid), f32),
        'w2': jax.random.uniform(k[3], (d_hid, d_model), f32, -s2, s2).astype(bf16),
        'b2': jnp.zeros((1, d_model), f32),
        'ln1_g': jnp.ones((1, d_model), f32),
        'ln1_b': jnp.zeros((1, d_model), f32),
        'ln2_g': jnp.ones((1, d_model), f32),
        'ln2_b': jnp.zeros((1, d_model), f32),
    }


def init_params(key, ntoken, d_model, nhead, d_hid, nlayers):
    keys = jax.random.split(key, 2 + nlayers)
    initrange = 0.1
    f32 = jnp.float32
    ntoken_pad = _round_up(ntoken, 128)   # lane-dense decoder output
    dec_w = jax.random.uniform(keys[1], (d_model, ntoken), f32, -initrange, initrange)
    dec_w = jnp.zeros((d_model, ntoken_pad), f32).at[:, :ntoken].set(dec_w)
    return {
        'ntoken': ntoken,
        'd_model': d_model,
        'nhead': nhead,
        'emb': jax.random.uniform(keys[0], (ntoken, d_model), f32, -initrange, initrange),
        'dec_w': dec_w.astype(jnp.bfloat16),
        'dec_b': jnp.zeros((1, ntoken_pad), f32),
        'pe': make_positional_encoding(d_model),
        'layers': [init_layer_params(keys[2 + i], d_model, d_hid, nhead)
                   for i in range(nlayers)],
    }


# ---------------------------------------------------------------------------
# Main
# ---------------------------------------------------------------------------

if __name__ == "__main__":
    ntoken, d_model, nhead, d_hid, nlayers = 50, 32, 4, 64, 2
    S, B = 8, 2

    root = jax.random.PRNGKey(0)
    pkey, skey = jax.random.split(root)
    params = init_params(pkey, ntoken, d_model, nhead, d_hid, nlayers)

    src = jax.random.randint(skey, (S, B), 0, ntoken, dtype=jnp.int32)

    out = transformer_forward(src, params)
    out = jax.block_until_ready(out)

    assert out.shape == (S, B, ntoken), out.shape
    assert out.dtype == jnp.float32
    assert bool(jnp.all(jnp.isfinite(out)))
    print("KERNEL_OK")
</pallas_src>

<mosaic_0001>
module attributes {stable_mosaic.version = 11 : i64} {
  func.func @_attn_block_kernel(%arg0: i32, %arg1: i32, %arg2: memref<1x8x32xbf16, #tpu.memory_space<vmem>>, %arg3: memref<32x96xbf16, #tpu.memory_space<vmem>>, %arg4: memref<1x96xf32, #tpu.memory_space<vmem>>, %arg5: memref<32x32xbf16, #tpu.memory_space<vmem>>, %arg6: memref<1x32xf32, #tpu.memory_space<vmem>>, %arg7: memref<1x32xf32, #tpu.memory_space<vmem>>, %arg8: memref<1x32xf32, #tpu.memory_space<vmem>>, %arg9: memref<1x8x32xbf16, #tpu.memory_space<vmem>>, %arg10: memref<12x8x8xbf16, #tpu.memory_space<vmem>>, %arg11: memref<4x8x1xf32, #tpu.memory_space<vmem>>, %arg12: memref<4x8x1xf32, #tpu.memory_space<vmem>>, %arg13: memref<4x8x8xf32, #tpu.memory_space<vmem>>) attributes {dimension_semantics = [#tpu.dimension_semantics<parallel>, #tpu.dimension_semantics<arbitrary>], iteration_bounds = array<i64: 2, 1>, scalar_prefetch = 0 : i64, scratch_operands = 4 : i64, tpu.core_type = #tpu.core_type<tc>, window_params = [{transform_indices = @transform_0, window_bounds = array<i64: 1, 8, 32>}, {pipeline_mode = #tpu.pipeline_mode<synchronous>, transform_indices = @transform_1, window_bounds = array<i64: 32, 96>}, {pipeline_mode = #tpu.pipeline_mode<synchronous>, transform_indices = @transform_2, window_bounds = array<i64: 1, 96>}, {pipeline_mode = #tpu.pipeline_mode<synchronous>, transform_indices = @transform_3, window_bounds = array<i64: 32, 32>}, {pipeline_mode = #tpu.pipeline_mode<synchronous>, transform_indices = @transform_4, window_bounds = array<i64: 1, 32>}, {pipeline_mode = #tpu.pipeline_mode<synchronous>, transform_indices = @transform_5, window_bounds = array<i64: 1, 32>}, {pipeline_mode = #tpu.pipeline_mode<synchronous>, transform_indices = @transform_6, window_bounds = array<i64: 1, 32>}, {transform_indices = @transform_7, window_bounds = array<i64: 1, 8, 32>}]} {
    %c0_i32 = arith.constant 0 : i32
    %0 = arith.cmpi eq, %arg1, %c0_i32 : i32
    %1 = arith.extui %0 : i1 to i32
    %c0_i32_0 = arith.constant 0 : i32
    %2 = arith.cmpi ne, %1, %c0_i32_0 : i32
    scf.if %2 {
      %c0_46 = arith.constant 0 : index
      %c0_47 = arith.constant 0 : index
      %c0_48 = arith.constant 0 : index
      %64 = vector.load %arg2[%c0_46, %c0_47, %c0_48] : memref<1x8x32xbf16, #tpu.memory_space<vmem>>, vector<1x8x32xbf16>
      %65 = vector.shape_cast %64 : vector<1x8x32xbf16> to vector<8x32xbf16>
      %c0_49 = arith.constant 0 : index
      %c0_50 = arith.constant 0 : index
      %66 = vector.load %arg3[%c0_49, %c0_50] : memref<32x96xbf16, #tpu.memory_space<vmem>>, vector<32x96xbf16>
      %cst_51 = arith.constant dense<0.000000e+00> : vector<8x96xf32>
      %67 = tpu.matmul %65, %66, %cst_51 {dimension_numbers = #tpu.dot_dimension_numbers<[1], [0], [0], [1], [0, 0, 1, 1], [], []>} : vector<8x32xbf16>, vector<32x96xbf16>, vector<8x96xf32> -> vector<8x96xf32>
      %c0_52 = arith.constant 0 : index
      %c0_53 = arith.constant 0 : index
      %68 = vector.load %arg4[%c0_52, %c0_53] : memref<1x96xf32, #tpu.memory_space<vmem>>, vector<1x96xf32>
      %69 = vector.broadcast %68 : vector<1x96xf32> to vector<8x96xf32>
      %70 = arith.addf %67, %69 : vector<8x96xf32>
      %71 = vector.shape_cast %70 : vector<8x96xf32> to vector<8x12x8xf32>
      %72 = tpu.transpose %71, [1, 0, 2] : vector<8x12x8xf32> -> vector<12x8x8xf32>
      %73 = arith.truncf %72 : vector<12x8x8xf32> to vector<12x8x8xbf16>
      %c0_54 = arith.constant 0 : index
      %c0_55 = arith.constant 0 : index
      %c0_56 = arith.constant 0 : index
      %74 = vector.load %arg10[%c0_54, %c0_55, %c0_56] : memref<12x8x8xbf16, #tpu.memory_space<vmem>>, vector<12x8x8xbf16>
      tpu.vector_store %arg10[%c0_54, %c0_55, %c0_56], %73 {strides = array<i32>} : memref<12x8x8xbf16, #tpu.memory_space<vmem>>, vector<12x8x8xbf16>,
    } else {
    }
    %c8_i32 = arith.constant 8 : i32
    %3 = arith.muli %arg1, %c8_i32 : i32
    %4 = tpu.assume_multiple %3, 8 : i32
    %c0 = arith.constant 0 : index
    %5 = arith.index_cast %4 : i32 to index
    %c0_1 = arith.constant 0 : index
    %6 = vector.load %arg10[%c0, %5, %c0_1] : memref<12x8x8xbf16, #tpu.memory_space<vmem>>, vector<4x8x8xbf16>
    %cst = arith.constant -1.000000e+30 : f32
    %7 = vector.broadcast %cst : f32 to vector<4x8x1xf32>
    %c0_2 = arith.constant 0 : index
    %c0_3 = arith.constant 0 : index
    %c0_4 = arith.constant 0 : index
    %8 = vector.load %arg11[%c0_2, %c0_3, %c0_4] : memref<4x8x1xf32, #tpu.memory_space<vmem>>, vector<4x8x1xf32>
    tpu.vector_store %arg11[%c0_2, %c0_3, %c0_4], %7 {strides = array<i32>} : memref<4x8x1xf32, #tpu.memory_space<vmem>>, vector<4x8x1xf32>,
    %cst_5 = arith.constant 0.000000e+00 : f32
    %9 = vector.broadcast %cst_5 : f32 to vector<4x8x1xf32>
    %c0_6 = arith.constant 0 : index
    %c0_7 = arith.constant 0 : index
    %c0_8 = arith.constant 0 : index
    %10 = vector.load %arg12[%c0_6, %c0_7, %c0_8] : memref<4x8x1xf32, #tpu.memory_space<vmem>>, vector<4x8x1xf32>
    tpu.vector_store %arg12[%c0_6, %c0_7, %c0_8], %9 {strides = array<i32>} : memref<4x8x1xf32, #tpu.memory_space<vmem>>, vector<4x8x1xf32>,
    %cst_9 = arith.constant 0.000000e+00 : f32
    %11 = vector.broadcast %cst_9 : f32 to vector<4x8x8xf32>
    %c0_10 = arith.constant 0 : index
    %c0_11 = arith.constant 0 : index
    %c0_12 = arith.constant 0 : index
    %12 = vector.load %arg13[%c0_10, %c0_11, %c0_12] : memref<4x8x8xf32, #tpu.memory_space<vmem>>, vector<4x8x8xf32>
    tpu.vector_store %arg13[%c0_10, %c0_11, %c0_12], %11 {strides = array<i32>} : memref<4x8x8xf32, #tpu.memory_space<vmem>>, vector<4x8x8xf32>,
    %c1_i32 = arith.constant 1 : i32
    %13 = arith.addi %arg1, %c1_i32 : i32
    %c0_i32_13 = arith.constant 0 : i32
    %14 = arith.subi %13, %c0_i32_13 : i32
    %c1_i32_14 = arith.constant 1 : i32
    %c1_i32_15 = arith.constant 1 : i32
    %15 = arith.subi %c1_i32_14, %c1_i32_15 : i32
    %16 = arith.addi %14, %15 : i32
    %c1_i32_16 = arith.constant 1 : i32
    %17 = arith.divsi %16, %c1_i32_16 : i32
    %c1_i32_17 = arith.constant 1 : i32
    %c0_i32_18 = arith.constant 0 : i32
    %c0_i32_19 = arith.constant 0 : i32
    %18 = arith.subi %17, %c0_i32_19 : i32
    %19 = arith.addi %c0_i32_19, %18 : i32
    %c1_i32_20 = arith.constant 1 : i32
    scf.for %arg14 = %c0_i32_19 to %19 step %c1_i32_20  : i32 {
      %64 = arith.muli %arg14, %c1_i32_17 : i32
      %65 = arith.addi %c0_i32_18, %64 : i32
      %c8_i32_46 = arith.constant 8 : i32
      %66 = arith.muli %65, %c8_i32_46 : i32
      %67 = tpu.assume_multiple %66, 8 : i32
      %c4 = arith.constant 4 : index
      %68 = arith.index_cast %67 : i32 to index
      %c0_47 = arith.constant 0 : index
      %69 = vector.load %arg10[%c4, %68, %c0_47] : memref<12x8x8xbf16, #tpu.memory_space<vmem>>, vector<4x8x8xbf16>
      %c8 = arith.constant 8 : index
      %70 = arith.index_cast %67 : i32 to index
      %c0_48 = arith.constant 0 : index
      %71 = vector.load %arg10[%c8, %70, %c0_48] : memref<12x8x8xbf16, #tpu.memory_space<vmem>>, vector<4x8x8xbf16>
      "tpu.trace_start"() <{level = 10 : i32, message = "hqd,hkd->hqk"}> : () -> ()
      %cst_49 = arith.constant dense<0.000000e+00> : vector<4x8x8xf32>
      %72 = tpu.matmul %6, %69, %cst_49 {dimension_numbers = #tpu.dot_dimension_numbers<[2], [2], [1], [1], [0, 0, 0, 1, 1, 1], [0], [0]>} : vector<4x8x8xbf16>, vector<4x8x8xbf16>, vector<4x8x8xf32> -> vector<4x8x8xf32>
      "tpu.trace_stop"() : () -> ()
      %73 = tpu.iota {dimensions = array<i32: 1>} : vector<4x8x8xi32>
      %74 = vector.broadcast %4 : i32 to vector<4x8x8xi32>
      %75 = arith.addi %74, %73 : vector<4x8x8xi32>
      %76 = tpu.iota {dimensions = array<i32: 2>} : vector<4x8x8xi32>
      %77 = vector.broadcast %67 : i32 to vector<4x8x8xi32>
      %78 = arith.addi %77, %76 : vector<4x8x8xi32>
      %79 = arith.cmpi sle, %78, %75 : vector<4x8x8xi32>
      %cst_50 = arith.constant -1.000000e+30 : f32
      %80 = vector.broadcast %cst_50 : f32 to vector<4x8x8xf32>
      %81 = arith.select %79, %72, %80 : vector<4x8x8xi1>, vector<4x8x8xf32>
      %c0_51 = arith.constant 0 : index
      %c0_52 = arith.constant 0 : index
      %c0_53 = arith.constant 0 : index
      %82 = vector.load %arg11[%c0_51, %c0_52, %c0_53] : memref<4x8x1xf32, #tpu.memory_space<vmem>>, vector<4x8x1xf32>
      %cst_54 = arith.constant dense<0xFF800000> : vector<4x8xf32>
      %83 = vector.multi_reduction <maximumf>, %81, %cst_54 [2] : vector<4x8x8xf32> to vector<4x8xf32>
      %84 = vector.shape_cast %83 : vector<4x8xf32> to vector<4x8x1xf32>
      %85 = arith.maximumf %82, %84 : vector<4x8x1xf32>
      %86 = arith.subf %82, %85 : vector<4x8x1xf32>
      %87 = math.exp %86 : vector<4x8x1xf32>
      %88 = vector.broadcast %85 : vector<4x8x1xf32> to vector<4x8x8xf32>
      %89 = arith.subf %81, %88 : vector<4x8x8xf32>
      %90 = math.exp %89 : vector<4x8x8xf32>
      %c0_55 = arith.constant 0 : index
      %c0_56 = arith.constant 0 : index
      %c0_57 = arith.constant 0 : index
      %91 = vector.load %arg12[%c0_55, %c0_56, %c0_57] : memref<4x8x1xf32, #tpu.memory_space<vmem>>, vector<4x8x1xf32>
      %92 = arith.mulf %87, %91 : vector<4x8x1xf32>
      %cst_58 = arith.constant dense<0.000000e+00> : vector<4x8xf32>
      %93 = vector.multi_reduction <add>, %90, %cst_58 [2] : vector<4x8x8xf32> to vector<4x8xf32>
      %94 = vector.shape_cast %93 : vector<4x8xf32> to vector<4x8x1xf32>
      %95 = arith.addf %92, %94 : vector<4x8x1xf32>
      %c0_59 = arith.constant 0 : index
      %c0_60 = arith.constant 0 : index
      %c0_61 = arith.constant 0 : index
      %96 = vector.load %arg12[%c0_59, %c0_60, %c0_61] : memref<4x8x1xf32, #tpu.memory_space<vmem>>, vector<4x8x1xf32>
      tpu.vector_store %arg12[%c0_59, %c0_60, %c0_61], %95 {strides = array<i32>} : memref<4x8x1xf32, #tpu.memory_space<vmem>>, vector<4x8x1xf32>,
      %c0_62 = arith.constant 0 : index
      %c0_63 = arith.constant 0 : index
      %c0_64 = arith.constant 0 : index
      %97 = vector.load %arg13[%c0_62, %c0_63, %c0_64] : memref<4x8x8xf32, #tpu.memory_space<vmem>>, vector<4x8x8xf32>
      %98 = vector.broadcast %87 : vector<4x8x1xf32> to vector<4x8x8xf32>
      %99 = arith.mulf %98, %97 : vector<4x8x8xf32>
      %100 = arith.truncf %90 : vector<4x8x8xf32> to vector<4x8x8xbf16>
      "tpu.trace_start"() <{level = 10 : i32, message = "hqk,hkd->hqd"}> : () -> ()
      %cst_65 = arith.constant dense<0.000000e+00> : vector<4x8x8xf32>
      %101 = tpu.matmul %100, %71, %cst_65 {dimension_numbers = #tpu.dot_dimension_numbers<[2], [1], [1], [2], [0, 0, 0, 1, 1, 2], [0], [0]>} : vector<4x8x8xbf16>, vector<4x8x8xbf16>, vector<4x8x8xf32> -> vector<4x8x8xf32>
      "tpu.trace_stop"() : () -> ()
      %102 = arith.addf %99, %101 : vector<4x8x8xf32>
      %c0_66 = arith.constant 0 : index
      %c0_67 = arith.constant 0 : index
      %c0_68 = arith.constant 0 : index
      %103 = vector.load %arg13[%c0_66, %c0_67, %c0_68] : memref<4x8x8xf32, #tpu.memory_space<vmem>>, vector<4x8x8xf32>
      tpu.vector_store %arg13[%c0_66, %c0_67, %c0_68], %102 {strides = array<i32>} : memref<4x8x8xf32, #tpu.memory_space<vmem>>, vector<4x8x8xf32>,
      %c0_69 = arith.constant 0 : index
      %c0_70 = arith.constant 0 : index
      %c0_71 = arith.constant 0 : index
      %104 = vector.load %arg11[%c0_69, %c0_70, %c0_71] : memref<4x8x1xf32, #tpu.memory_space<vmem>>, vector<4x8x1xf32>
      tpu.vector_store %arg11[%c0_69, %c0_70, %c0_71], %85 {strides = array<i32>} : memref<4x8x1xf32, #tpu.memory_space<vmem>>, vector<4x8x1xf32>,
    }
    %c0_21 = arith.constant 0 : index
    %c0_22 = arith.constant 0 : index
    %c0_23 = arith.constant 0 : index
    %20 = vector.load %arg13[%c0_21, %c0_22, %c0_23] : memref<4x8x8xf32, #tpu.memory_space<vmem>>, vector<4x8x8xf32>
    %c0_24 = arith.constant 0 : index
    %c0_25 = arith.constant 0 : index
    %c0_26 = arith.constant 0 : index
    %21 = vector.load %arg12[%c0_24, %c0_25, %c0_26] : memref<4x8x1xf32, #tpu.memory_space<vmem>>, vector<4x8x1xf32>
    %22 = tpu.reciprocal %21 {approx = true} : vector<4x8x1xf32> -> vector<4x8x1xf32>
    %23 = vector.broadcast %22 : vector<4x8x1xf32> to vector<4x8x8xf32>
    %24 = arith.mulf %20, %23 : vector<4x8x8xf32>
    %25 = tpu.transpose %24, [1, 0, 2] : vector<4x8x8xf32> -> vector<8x4x8xf32>
    %26 = vector.shape_cast %25 : vector<8x4x8xf32> to vector<8x32xf32>
    %27 = arith.truncf %26 : vector<8x32xf32> to vector<8x32xbf16>
    %c0_27 = arith.constant 0 : index
    %c0_28 = arith.constant 0 : index
    %28 = vector.load %arg5[%c0_27, %c0_28] : memref<32x32xbf16, #tpu.memory_space<vmem>>, vector<32x32xbf16>
    %cst_29 = arith.constant dense<0.000000e+00> : vector<8x32xf32>
    %29 = tpu.matmul %27, %28, %cst_29 {dimension_numbers = #tpu.dot_dimension_numbers<[1], [0], [0], [1], [0, 0, 1, 1], [], []>} : vector<8x32xbf16>, vector<32x32xbf16>, vector<8x32xf32> -> vector<8x32xf32>
    %c0_30 = arith.constant 0 : index
    %c0_31 = arith.constant 0 : index
    %30 = vector.load %arg6[%c0_30, %c0_31] : memref<1x32xf32, #tpu.memory_space<vmem>>, vector<1x32xf32>
    %31 = vector.broadcast %30 : vector<1x32xf32> to vector<8x32xf32>
    %32 = arith.addf %29, %31 : vector<8x32xf32>
    %c0_32 = arith.constant 0 : index
    %33 = arith.index_cast %4 : i32 to index
    %c0_33 = arith.constant 0 : index
    %34 = vector.load %arg2[%c0_32, %33, %c0_33] : memref<1x8x32xbf16, #tpu.memory_space<vmem>>, vector<1x8x32xbf16>
    %35 = vector.shape_cast %34 : vector<1x8x32xbf16> to vector<8x32xbf16>
    %36 = arith.extf %35 : vector<8x32xbf16> to vector<8x32xf32>
    %37 = arith.addf %36, %32 : vector<8x32xf32>
    %cst_34 = arith.constant dense<0.000000e+00> : vector<8xf32>
    %38 = vector.multi_reduction <add>, %37, %cst_34 [1] : vector<8x32xf32> to vector<8xf32>
    %39 = vector.shape_cast %38 : vector<8xf32> to vector<8x1xf32>
    %cst_35 = arith.constant 3.200000e+01 : f32
    %40 = vector.broadcast %cst_35 : f32 to vector<8x1xf32>
    %41 = arith.divf %39, %40 : vector<8x1xf32>
    %42 = vector.broadcast %41 : vector<8x1xf32> to vector<8x32xf32>
    %43 = arith.subf %37, %42 : vector<8x32xf32>
    %44 = arith.mulf %43, %43 : vector<8x32xf32>
    %cst_36 = arith.constant dense<0.000000e+00> : vector<8xf32>
    %45 = vector.multi_reduction <add>, %44, %cst_36 [1] : vector<8x32xf32> to vector<8xf32>
    %46 = vector.shape_cast %45 : vector<8xf32> to vector<8x1xf32>
    %cst_37 = arith.constant 3.200000e+01 : f32
    %47 = vector.broadcast %cst_37 : f32 to vector<8x1xf32>
    %48 = arith.divf %46, %47 : vector<8x1xf32>
    %cst_38 = arith.constant 9.99999974E-6 : f32
    %49 = vector.broadcast %cst_38 : f32 to vector<8x1xf32>
    %50 = arith.addf %48, %49 : vector<8x1xf32>
    %51 = math.rsqrt %50 : vector<8x1xf32>
    %52 = vector.broadcast %51 : vector<8x1xf32> to vector<8x32xf32>
    %53 = arith.mulf %43, %52 : vector<8x32xf32>
    %c0_39 = arith.constant 0 : index
    %c0_40 = arith.constant 0 : index
    %54 = vector.load %arg7[%c0_39, %c0_40] : memref<1x32xf32, #tpu.memory_space<vmem>>, vector<1x32xf32>
    %55 = vector.broadcast %54 : vector<1x32xf32> to vector<8x32xf32>
    %56 = arith.mulf %53, %55 : vector<8x32xf32>
    %c0_41 = arith.constant 0 : index
    %c0_42 = arith.constant 0 : index
    %57 = vector.load %arg8[%c0_41, %c0_42] : memref<1x32xf32, #tpu.memory_space<vmem>>, vector<1x32xf32>
    %58 = vector.broadcast %57 : vector<1x32xf32> to vector<8x32xf32>
    %59 = arith.addf %56, %58 : vector<8x32xf32>
    %60 = arith.truncf %59 : vector<8x32xf32> to vector<8x32xbf16>
    %c0_43 = arith.constant 0 : index
    %c0_44 = arith.constant 0 : index
    %c0_45 = arith.constant 0 : index
    %61 = vector.load %arg9[%c0_43, %c0_44, %c0_45] : memref<1x8x32xbf16, #tpu.memory_space<vmem>>, vector<1x8x32xbf16>
    %62 = vector.shape_cast %61 : vector<1x8x32xbf16> to vector<8x32xbf16>
    %63 = vector.shape_cast %60 : vector<8x32xbf16> to vector<1x8x32xbf16>
    tpu.vector_store %arg9[%c0_43, %c0_44, %c0_45], %63 {strides = array<i32>} : memref<1x8x32xbf16, #tpu.memory_space<vmem>>, vector<1x8x32xbf16>,
    return
  }
  func.func @transform_0(%arg0: i32, %arg1: i32) -> (i32, i32, i32) {
    %c0_i32 = arith.constant 0 : i32
    %c0_i32_0 = arith.constant 0 : i32
    %c0_i32_1 = arith.constant 0 : i32
    return %arg0, %c0_i32, %c0_i32_0 : i32, i32, i32
  }
  func.func @transform_1(%arg0: i32, %arg1: i32) -> (i32, i32) {
    %c0_i32 = arith.constant 0 : i32
    %c0_i32_0 = arith.constant 0 : i32
    %c0_i32_1 = arith.constant 0 : i32
    return %c0_i32, %c0_i32_0 : i32, i32
  }
  func.func @transform_2(%arg0: i32, %arg1: i32) -> (i32, i32) {
    %c0_i32 = arith.constant 0 : i32
    %c0_i32_0 = arith.constant 0 : i32
    %c0_i32_1 = arith.constant 0 : i32
    return %c0_i32, %c0_i32_0 : i32, i32
  }
  func.func @transform_3(%arg0: i32, %arg1: i32) -> (i32, i32) {
    %c0_i32 = arith.constant 0 : i32
    %c0_i32_0 = arith.constant 0 : i32
    %c0_i32_1 = arith.constant 0 : i32
    return %c0_i32, %c0_i32_0 : i32, i32
  }
  func.func @transform_4(%arg0: i32, %arg1: i32) -> (i32, i32) {
    %c0_i32 = arith.constant 0 : i32
    %c0_i32_0 = arith.constant 0 : i32
    %c0_i32_1 = arith.constant 0 : i32
    return %c0_i32, %c0_i32_0 : i32, i32
  }
  func.func @transform_5(%arg0: i32, %arg1: i32) -> (i32, i32) {
    %c0_i32 = arith.constant 0 : i32
    %c0_i32_0 = arith.constant 0 : i32
    %c0_i32_1 = arith.constant 0 : i32
    return %c0_i32, %c0_i32_0 : i32, i32
  }
  func.func @transform_6(%arg0: i32, %arg1: i32) -> (i32, i32) {
    %c0_i32 = arith.constant 0 : i32
    %c0_i32_0 = arith.constant 0 : i32
    %c0_i32_1 = arith.constant 0 : i32
    return %c0_i32, %c0_i32_0 : i32, i32
  }
  func.func @transform_7(%arg0: i32, %arg1: i32) -> (i32, i32, i32) {
    %c0_i32 = arith.constant 0 : i32
    %c0_i32_0 = arith.constant 0 : i32
    return %arg0, %arg1, %c0_i32 : i32, i32, i32
  }
}

</mosaic_0001>

<bundles_post_ra>
// kernel: tpu_custom_call.1
= control target key start
LH: loop header
LB: loop body
LE: loop exit
PB: predicated region body
PF: predicated region fallthrough
CT: control target
= control target key end

     0   :  { %12 = vsyncpa [#allocation7], 0  ;;  %s2947_s0 = inlined_call_operand.hbm [shape: bf16[2,8,32], index: 0, kind: input, shape index: {}]   ;;  %s2948_s1 = inlined_call_operand.hbm [shape: bf16[32,96], index: 1, kind: input, shape index: {}]   ;;  %s2949_s2 = inlined_call_operand.vmem [shape: f32[1,96], index: 2, kind: input, shape index: {}]   ;;  %s2950_s3 = inlined_call_operand.hbm [shape: bf16[32,32], index: 3, kind: input, shape index: {}]   ;;  %s2951_s4 = inlined_call_operand.vmem [shape: f32[1,32], index: 4, kind: input, shape index: {}]   ;;  %s2952_s5 = inlined_call_operand.vmem [shape: f32[1,32], index: 5, kind: input, shape index: {}]   ;;  %s2953_s6 = inlined_call_operand.vmem [shape: f32[1,32], index: 6, kind: input, shape index: {}]   ;;  %s2954_s7 = inlined_call_operand.hbm [shape: bf16[2,8,32], index: 7, kind: output, shape index: {}]  }
   0x1   :  { %14 = vsyncpa [#allocation7 + $0x1], 0 }
   0x2   :  { %15 = vsyncpa [#allocation10], 0 }
   0x3   :  { %16 = vsyncpa [#allocation8], 0 }
   0x4   :  { %18 = vsyncpa [#allocation8 + $0x1], 0  ;;  %s2410_s24 = smov 0   ;;  %s2412_s25 = smov 0  }
   0x5   :  { %s2414_s26 = smov 0   ;;  %s2416_s27 = smov 0  }
   0x6   :  { %s2418_s28 = smov 0   ;;  %s2420_s29 = smov 0  }
   0x7 LB: > { %2961 = sst [smem:[#allocation16_spill]] %s2315_s24  ;;  %s1865_s30 = sadd.s32 4294967295, %s2335_s29   ;;  %s2335_s29 = sphi %s2420_s29, %s24_s29   ;;  %s2331_s28 = sphi %s2418_s28, %s2982_s28   ;;  %s2327_s27 = sphi %s2416_s27, %s2981_s27   ;;  %s2323_s26 = sphi %s2414_s26, %s2980_s26   ;;  %s2319_s25 = sphi %s2412_s25, %s2979_s25   ;;  %s2315_s24 = sphi %s2410_s24, %s2978_s24  }
   0x8   : > { %s1866_s8 = sadd.s32 4294967294, %s2335_s29   ;;  %p56_p0 = scmp.ne.s32.totalorder %s2319_s25, %s2315_s24 }
   0x9   : > { %p2444_p1 = scmp.eq.s32.totalorder %s1865_s30, 0  ;;  %p2448_p2 = scmp.eq.s32.totalorder %s1865_s30, 1 }
   0xa   : > { %p214_p3 = scmp.eq.s32.totalorder %s1866_s8, 1  ;;  %p1867_p5 = scmp.ge.s32.totalorder %s2335_s29, 1 }
   0xb   : > { %s2962_s9 = scalar_select %p2444_p1, 1, 0 }
   0xc   : > { %p2454_p4 = por %p2444_p1, %p56_p0  ;;  %p2459_p6 = por %p214_p3, %p56_p0 }
   0xd   : > { %p221_p7 = scmp.lt.s32.totalorder %s2335_s29, 3  ;;  %s2341_s14 = smov [#allocation9]  }
   0xe   : > { %s2964_s11 = scalar_select %p2454_p4, 1, 0 }
   0xf   : > { %s2965_s12 = scalar_select %p2459_p6, 1, 0 }
  0x10   : > { %p2464_p8 = pnand %p1867_p5, %p221_p7  ;;  %s233_s15 = sshll.u32 %s2341_s14, 4  ;;  %s2468_s15 = int_to_ptr.vmem [resolvable:$true] %s233_s15 }
  0x11   : > { %2966 = sst [smem:[#allocation17_spill]] %s2965_s12  ;;  %s2342_s17 = smov [#allocation11]  }
  0x12   : > { %p2021_p9 = pneg %p2464_p8  ;;  %s249_s18 = sshll.u32 %s2342_s17, 4  ;;  %s2479_s18 = int_to_ptr.vmem [resolvable:$true] %s249_s18 }
  0x13   : > { %s2159_s21 = scalar_lea.hbm %s2948_s1, 256 }
  0x14   : > { %p2475_p11 = pnand %p2021_p9, %p2444_p1  ;;  %p2160_p12 = scmp.ne.s32.totalorder %s2948_s1, %s2159_s21 }
  0x15   : > { %p2166_p5 = scmp.lt.u32.totalorder %s2159_s21, %s2948_s1 }
  0x16   : > { %p2161_p13 = pneg %p2475_p11 }
  0x18   : > { %p2162_p0 = pnand %p2161_p13, %p2160_p12 }
  0x1a   : > { %p2163_p3 = pneg %p2162_p0 }
  0x1c   : > { %p2168_p7 = pnand %p2166_p5, %p2163_p3 }
  0x1e   : > { %2171 = shalt.err (!%p2168_p7)
}
  0x1f   : > { %s2172_s14 = scalar_lea.vmem %s2468_s15, 256  ;;  %p2180_p1 = scmp.lt.s32.totalorder %s2468_s15, %s2468_s15 }
  0x20   : > { %p2173_p9 = scmp.ne.s32.totalorder %s2468_s15, %s2172_s14  ;;  %p2181_p12 = scmp.lt.s32.totalorder %s2172_s14, %s2172_s14 }
  0x22   : > { %p2175_p10 = pnand %p2173_p9, %p2161_p13  ;;  %p2182_p0 = por %p2181_p12, %p2180_p1 }
  0x24   : > { %p2176_p6 = pneg %p2175_p10 }
  0x26   : > { %p2183_p4 = pnand %p2182_p0, %p2176_p6 }
  0x28   : > { %2186 = shalt.err (!%p2183_p4)
}
  0x29   : > { %s2343_s17 = smov 64   ;;  %s2344_s19 = smov 4  }
  0x2a   : > { %2024 = dma.hbm_to_vmem [thread:$0]  (!%p2475_p11), %s2948_s1, 256, %s2468_s15, [#allocation10], %s2343_s17, %s2343_s17, %s2344_s19  }
  0x2b   : > { %s2187_s30 = scalar_lea.hbm %s2950_s3, 256 }
  0x2c   : > { %p2188_p1 = scmp.ne.s32.totalorder %s2950_s3, %s2187_s30  ;;  %p2194_p10 = scmp.lt.u32.totalorder %s2187_s30, %s2950_s3 }
  0x2e   : > { %p2190_p4 = pnand %p2188_p1, %p2161_p13 }
  0x30   : > { %p2191_p6 = pneg %p2190_p4 }
  0x32   : > { %p2196_p3 = pnand %p2194_p10, %p2191_p6 }
  0x34   : > { %2199 = shalt.err (!%p2196_p3)
}
  0x35   : > { %s2200_s15 = scalar_lea.vmem %s2479_s18, 256  ;;  %p2208_p12 = scmp.lt.s32.totalorder %s2479_s18, %s2479_s18 }
  0x36   : > { %p2201_p5 = scmp.ne.s32.totalorder %s2479_s18, %s2200_s15  ;;  %p2209_p0 = scmp.lt.s32.totalorder %s2200_s15, %s2200_s15 }
  0x38   : > { %p2203_p7 = pnand %p2201_p5, %p2161_p13  ;;  %p2210_p1 = por %p2209_p0, %p2208_p12 }
  0x3a   : > { %p2204_p9 = pneg %p2203_p7 }
  0x3c   : > { %p2211_p4 = pnand %p2210_p1, %p2204_p9 }
  0x3e   : > { %2214 = shalt.err (!%p2211_p4)
}
  0x3f   : > { %2027 = dma.hbm_to_vmem [thread:$0]  (!%p2475_p11), %s2950_s3, 256, %s2479_s18, [#allocation10], %s2343_s17, %s2343_s17, %s2344_s19  }
  0x40   : > { %s36_s20 = sadd.s32 1, %s2331_s28  ;;  %s43_s21 = sadd.s32 1, %s2323_s26 }
  0x41   : > { %p38_p13 = scmp.ge.s32.totalorder %s36_s20, 2  ;;  %p50_p6 = scmp.ne.s32.totalorder %s2323_s26, %s2319_s25 }
  0x42   : > { %p51_p10 = scmp.eq.s32.totalorder %s2335_s29, 0  ;;  %p2038_p3 = scmp.lt.s32.totalorder %s2335_s29, 2 }
  0x43   : > { %s2984_s20 = smov (%p38_p13, %s36_s20), 0  ;;  %p2543_p7 = por %p2448_p2, %p50_p6 }
  0x44   : > { %p52_p5 = por %p51_p10, %p50_p6  ;;  %s40_s22 = ssub.s32 %s2331_s28, %s2984_s20 }
  0x45   : > { %s2969_s16 = scalar_select %p2543_p7, 1, 0 }
  0x46   : > { %s272_s23 = sand.u32 1, %s2323_s26   ;;  %p41_p9 = scmp.eq.s32.totalorder %s40_s22, 0 }
  0x47   : > { %s1871_s18 = sshll.u32 %s272_s23, 2  ;;  %s1872_s17 = sshll.u32 %s2331_s28, 6 }
  0x48   : > { %s2552_s19 = scalar_select %p41_p9, %s2323_s26, %s43_s21  }
  0x49   : > { %s2557_s14 = scalar_lea.hbm %s2947_s0, %s1872_s17  ;;  %s276_s10 = scalar_lea.vmem [#allocation6], %s1871_s18 }
  0x4a   : > { %s283_s15 = sshll.u32 %s276_s10, 4  ;;  %p2561_p2 = pnand %p2038_p3, %p52_p5  ;;  %s2565_s15 = int_to_ptr.vmem [resolvable:$true] %s283_s15 }
  0x4b   : > { %s273_s12 = scalar_lea.sflag [#allocation7], %s272_s23  ;;  %s2215_s21 = scalar_lea.hbm %s2557_s14, 64 }
  0x4c   : > { %p2216_p11 = scmp.ne.s32.totalorder %s2557_s14, %s2215_s21  ;;  %p2217_p12 = pneg %p2561_p2 }
  0x4d   : > { %s2220_s17 = scalar_lea.hbm %s2947_s0, 128  ;;  %p2221_p4 = scmp.lt.u32.totalorder %s2557_s14, %s2947_s0 }
  0x4e   : > { %p2218_p0 = pnand %p2217_p12, %p2216_p11  ;;  %p2222_p13 = scmp.lt.u32.totalorder %s2220_s17, %s2215_s21 }
  0x4f   : > { %p2224_p10 = scmp.lt.u32.totalorder %s2215_s21, %s2557_s14 }
  0x50   : > { %p2219_p1 = pneg %p2218_p0  ;;  %p2223_p6 = por %p2222_p13, %p2221_p4 }
  0x52   : > { %p2225_p3 = por %p2224_p10, %p2223_p6 }
  0x54   : > { %p2226_p5 = pnand %p2225_p3, %p2219_p1 }
  0x56   : > { %2229 = shalt.err (!%p2226_p5)
}
  0x57   : > { %s2230_s23 = scalar_lea.vmem %s2565_s15, 64  ;;  %s2345_s10 = smov [#allocation6]  }
  0x58   : > { %p2231_p9 = scmp.ne.s32.totalorder %s2565_s15, %s2230_s23  ;;  %s2235_s22 = sshll.u32 %s2345_s10, 4  ;;  %s2236_s22 = int_to_ptr.vmem [resolvable:$false] %s2235_s22 }
  0x59   : > { %s2237_s18 = scalar_lea.vmem %s2236_s22, 128  ;;  %p2238_p7 = scmp.lt.s32.totalorder %s2565_s15, %s2236_s22 }
  0x5a   : > { %p2233_p11 = pnand %p2231_p9, %p2217_p12  ;;  %p2239_p4 = scmp.lt.s32.totalorder %s2237_s18, %s2230_s23 }
  0x5c   : > { %p2234_p0 = pneg %p2233_p11  ;;  %p2240_p13 = por %p2239_p4, %p2238_p7 }
  0x5e   : > { %p2241_p6 = pnand %p2240_p13, %p2234_p0 }
  0x60   : > { %2244 = shalt.err (!%p2241_p6)
}
  0x61   : > { %2031 = dma.hbm_to_vmem [thread:$0]  (!%p2561_p2), %s2557_s14, 64, %s2565_s15, %s273_s12  }
  0x62   : > { %292 = sbr.rel (%p2464_p8) target bundleno = 2048 (0x800), region = 48  ;;  %s2595_s21 = sand.u32 (!%p2464_p8), 1, %s2319_s25  }
  0x63   : > { %s1874_s17 = sshll.u32 (!%p2464_p8), %s2595_s21, 2  ;;  %s295_s30 = scalar_lea.sflag (!%p2464_p8), [#allocation7], %s2595_s21 }
  0x64   : > { %s2601_s8 = scalar_lea.vmem (!%p2464_p8), [#allocation6], %s1874_s17  ;;  %p2971_p7 = scmp.ne.s32.totalorder (!%p2464_p8), %s2964_s11, 0 }
  0x69   : > { %2302 = dma.done.wait (%p2971_p7), %s295_s30, 64  }
  0x6a   : > { %2304 = vsyncadd (%p2971_p7), %s295_s30, 4294967232  ;;  %p2972_p2 = scmp.ne.s32.totalorder %s2962_s9, 0 }
  0x6c   : > { %2306 = dma.done.wait (%p2972_p2), [#allocation10], 512  }
  0x6d   : > { %2308 = vsyncadd (%p2972_p2), [#allocation10], 4294966784  ;;  %vm886_vm0 = vcmask 7168   ;;  %vm895_vm1 = vcmask 64512   ;;  %v2346_v0 = vmov 0.0   ;;  %vm2348_vm2 = vmmov 0  }
  0x6e   : > { %1945 = vmatprep.subr.bf16.mxu0 %v2346_v0  ;;  %891 = vst.msk [vmem:[#allocation4] sm:$0xff] %vm886_vm0, %v2346_v0  ;;  %892 = vst.msk [vmem:[#allocation4 + $0x8] sm:$0xff] %vm886_vm0, %v2346_v0  ;;  %v2347_v1 = vmov -1e+30   ;;  %1949 = vmatprep.mubr.msk.bf16.mxu0 %vm2348_vm2, %v2346_v0  ;;  %v2125_v2 = vld [vmem:[#allocation9] sm:$0xff]   ;;  %v2126_v3 = vld [vmem:[#allocation9 + $0x8] sm:$0xff]   ;;  %v449_v13 = vlaneseq }
  0x6f   : > { %893 = vst.msk [vmem:[#allocation4 + $0x10] sm:$0xff] %vm886_vm0, %v2346_v0  ;;  %894 = vst.msk [vmem:[#allocation4 + $0x18] sm:$0xff] %vm886_vm0, %v2346_v0  ;;  %1946 = vmatpush3.bf16.msra.mxu0 %v2125_v2  ;;  %v342_v4 = vld [vmem:[%s2601_s8] sm:$0xf]  ;;  %vm366_vm3 = vcmask 261120   ;;  %s2349_s13 = smov 104  }
  0x70   : > { %896 = vst.msk [vmem:[#allocation5] sm:$0xff] %vm895_vm1, %v2346_v0  ;;  %897 = vst.msk [vmem:[#allocation5 + $0x8] sm:$0xff] %vm895_vm1, %v2346_v0  ;;  %1947 = vmatprep.subr.bf16.mxu0 %v2346_v0  ;;  %v1878_v5 = vld [vmem:[%s2949_s2] ss:$0 sm:$0xff]  ;;  %s2350_s14 = smov 120   ;;  %s2351_s15 = smov 96  }
  0x71   : > { %898 = vst.msk [vmem:[#allocation5 + $0x10] sm:$0xff] %vm895_vm1, %v2346_v0  ;;  %899 = vst.msk [vmem:[#allocation5 + $0x18] sm:$0xff] %vm895_vm1, %v2346_v0  ;;  %s2352_s24 = smov 112   ;;  %s2353_s12 = smov 80   ;;  %v2360_v11 = vmov 1983009808  }
  0x72   : > { %887 = vst.msk [vmem:[#allocation3] sm:$0xff] %vm886_vm0, %v2347_v1  ;;  %888 = vst.msk [vmem:[#allocation3 + $0x8] sm:$0xff] %vm886_vm0, %v2347_v1  ;;  %s2354_s23 = smov 88   ;;  %s2355_s10 = smov 64   ;;  %v447_v12 = vunpack.c.l.s4 %v2360_v11  ;;  %v2361_v14 = vmov 1934713408  }
  0x73   : > { %889 = vst.msk [vmem:[#allocation3 + $0x10] sm:$0xff] %vm886_vm0, %v2347_v1  ;;  %890 = vst.msk [vmem:[#allocation3 + $0x18] sm:$0xff] %vm886_vm0, %v2347_v1  ;;  %1948 = vmatpush3.bf16.msra.mxu0 %v2126_v3  ;;  %s2356_s22 = smov 72   ;;  %s2357_s18 = smov 48   ;;  %v511_v15 = vunpack.c.l.s4 %v2361_v14  ;;  %v2641_v17 = vshrl.u32 %v449_v13, 7  ;;  %vm864_vm4 = vcmask 60416  }
  0x74   : > { %s2358_s30 = smov 56   ;;  %s2359_s9 = smov 40   ;;  %v448_v16 = vunpack.c.0.s8 %v447_v12 }
  0x75   : > { %v512_v20 = vunpack.c.0.s8 %v511_v15  ;;  %s2719_s11 = scalar_lea.vmem [#allocation12], %s1874_s17 }
  0x76   : > { %1950 = vmatmul.mubr.msk.bf16.vlgmr.msra.gmra.mrb[0].mxu0 %vm366_vm3, %v342_v4  ;;  %v2644_v21 = vsub.s32 %v448_v16, %v2641_v17 }
  0x77   : > { %v2647_v28 = vsub.s32 %v512_v20, %v2641_v17 }
 0x149   : > { %v404_v6 = vpop.f32.mrb[0].mxu0 }
 0x14a   : > { %v405_v7 = vadd.f32 %v1878_v5, %v404_v6  ;;  %v1951_v8 = vpop.f32.mrb[1].mxu0 }
 0x14b   : > { %v407_v9 = vpop.f32.mrb[2].mxu0 }
 0x14c   : > { %417 = vrot.lane.b32.xlu1 %v405_v7, %s2349_s13  ;;  %411 = vrot.lane.b32.xlu0 %v405_v7, %s2350_s14  ;;  %v1952_v10 = vpop.f32.mrb[3].mxu0  ;;  %s2721_s13 = smov 0  }
 0x150   : > { %420 = vrot.lane.b32.xlu1 %v405_v7, %s2351_s15  ;;  %414 = vrot.lane.b32.xlu0 %v405_v7, %s2352_s24 }
 0x154   : > { %426 = vrot.lane.b32.xlu1 %v405_v7, %s2353_s12  ;;  %423 = vrot.lane.b32.xlu0 %v405_v7, %s2354_s23 }
 0x158   : > { %432 = vrot.lane.b32.xlu1 %v405_v7, %s2355_s10  ;;  %429 = vrot.lane.b32.xlu0 %v405_v7, %s2356_s22 }
 0x15c   : > { %438 = vrot.lane.b32.xlu1 %v405_v7, %s2357_s18  ;;  %435 = vrot.lane.b32.xlu0 %v405_v7, %s2358_s30 }
 0x160   : > { %441 = vrot.lane.b32.xlu0 %v405_v7, %s2359_s9 }
 0x1be   : > { %v418_v18 = vpop.permute.xlu1 %417  ;;  %v412_v19 = vpop.permute.xlu0 %411 }
 0x1bf   : > { %v460_v22 = vcombine.low %v412_v19, %v418_v18  ;;  %v461_v23 = vcombine.high %v412_v19, %v418_v18 }
 0x1c1   : > { %v468_v29 = vrot.slane %v460_v22, %v2644_v21  ;;  %v475_v30 = vrot.slane %v461_v23, %v2644_v21 }
 0x1c2   : > { %v421_v24 = vpop.permute.xlu1 %420  ;;  %v415_v25 = vpop.permute.xlu0 %414 }
 0x1c3   : > { %v444_v26 = vcombine.low %v405_v7, %v415_v25  ;;  %v445_v27 = vcombine.high %v405_v7, %v415_v25 }
 0x1c5   : > { %v452_v31 = vrot.slane %v444_v26, %v2644_v21  ;;  %v459_v32 = vrot.slane %v445_v27, %v2644_v21 }
 0x1c6   : > { %v424_v33 = vpop.permute.xlu0 %423  ;;  %v427_v38 = vpop.permute.xlu1 %426 }
 0x1c7   : > { %v508_v34 = vcombine.low %v452_v31, %v468_v29  ;;  %v509_v35 = vcombine.high %v452_v31, %v468_v29  ;;  %v524_v36 = vcombine.low %v459_v32, %v475_v30  ;;  %v525_v37 = vcombine.high %v459_v32, %v475_v30 }
 0x1c8   : > { %v476_v43 = vcombine.low %v421_v24, %v427_v38  ;;  %v477_v44 = vcombine.high %v421_v24, %v427_v38 }
 0x1c9   : > { %v516_v39 = vrot.slane %v508_v34, %v2647_v28  ;;  %v523_v40 = vrot.slane %v509_v35, %v2647_v28  ;;  %v532_v41 = vrot.slane %v524_v36, %v2647_v28  ;;  %v539_v42 = vrot.slane %v525_v37, %v2647_v28 }
 0x1ca   : > { %v430_v45 = vpop.permute.xlu0 %429  ;;  %v484_v56 = vrot.slane %v476_v43, %v2644_v21  ;;  %v491_v57 = vrot.slane %v477_v44, %v2644_v21  ;;  %v433_v58 = vpop.permute.xlu1 %432 }
 0x1cb   : > { %v1882_v46 = vcombine.low %v516_v39, %v523_v40  ;;  %v1884_v47 = vcombine.high %v516_v39, %v523_v40  ;;  %v1886_v48 = vcombine.low %v532_v41, %v539_v42  ;;  %v1888_v49 = vcombine.high %v532_v41, %v539_v42 }
 0x1cc   : > { %v492_v50 = vcombine.low %v424_v33, %v430_v45  ;;  %v493_v51 = vcombine.high %v424_v33, %v430_v45 }
 0x1cd   : > { %v656_v52 = vrot.slane %v1882_v46, %v2644_v21  ;;  %v672_v53 = vrot.slane %v1884_v47, %v2644_v21  ;;  %v688_v54 = vrot.slane %v1886_v48, %v2644_v21  ;;  %v704_v55 = vrot.slane %v1888_v49, %v2644_v21 }
 0x1ce   : > { %v500_v59 = vrot.slane %v492_v50, %v2644_v21  ;;  %v507_v60 = vrot.slane %v493_v51, %v2644_v21  ;;  %v436_v61 = vpop.permute.xlu0 %435  ;;  %v439_v26 = vpop.permute.xlu1 %438 }
 0x1cf   : > { %v712_v62 = vcombine.low %v656_v52, %v672_v53  ;;  %v713_v63 = vcombine.high %v656_v52, %v672_v53  ;;  %v744_v1 = vcombine.low %v688_v54, %v704_v55  ;;  %v745_v2 = vcombine.high %v688_v54, %v704_v55 }
 0x1d0   : > { %v540_v3 = vcombine.low %v484_v56, %v500_v59  ;;  %v541_v4 = vcombine.high %v484_v56, %v500_v59  ;;  %v556_v5 = vcombine.low %v491_v57, %v507_v60  ;;  %v557_v6 = vcombine.high %v491_v57, %v507_v60 }
 0x1d1   : > { %v720_v7 = vrot.slane %v712_v62, %v2647_v28  ;;  %v727_v8 = vrot.slane %v713_v63, %v2647_v28  ;;  %v752_v9 = vrot.slane %v744_v1, %v2647_v28  ;;  %v759_v10 = vrot.slane %v745_v2, %v2647_v28 }
 0x1d2   : > { %v548_v11 = vrot.slane %v540_v3, %v2647_v28  ;;  %v555_v12 = vrot.slane %v541_v4, %v2647_v28  ;;  %v564_v14 = vrot.slane %v556_v5, %v2647_v28  ;;  %v571_v15 = vrot.slane %v557_v6, %v2647_v28  ;;  %v442_v27 = vpop.permute.xlu0 %441 }
 0x1d3   : > { %v776_v16 = vcombine.low %v720_v7, %v752_v9  ;;  %v777_v18 = vcombine.high %v720_v7, %v752_v9  ;;  %v778_v19 = vcombine.low %v727_v8, %v759_v10  ;;  %v779_v20 = vcombine.high %v727_v8, %v759_v10 }
 0x1d4   : > { %v1883_v22 = vcombine.low %v548_v11, %v555_v12  ;;  %v1885_v23 = vcombine.high %v548_v11, %v555_v12  ;;  %v1887_v24 = vcombine.low %v564_v14, %v571_v15  ;;  %v1889_v25 = vcombine.high %v564_v14, %v571_v15 }
 0x1d5   : > { %v852_v29 = vpack.c.bf16 %v776_v16, %v776_v16  ;;  %v853_v30 = vpack.c.bf16 %v777_v18, %v777_v18  ;;  %v854_v31 = vpack.c.bf16 %v778_v19, %v778_v19  ;;  %v855_v32 = vpack.c.bf16 %v779_v20, %v779_v20 }
 0x1d6   : > { %v663_v33 = vrot.slane %v1883_v22, %v2644_v21  ;;  %v679_v34 = vrot.slane %v1885_v23, %v2644_v21  ;;  %v695_v35 = vrot.slane %v1887_v24, %v2644_v21  ;;  %v711_v36 = vrot.slane %v1889_v25, %v2644_v21 }
 0x1d7   : > { %865 = vst.msk [vmem:[#allocation2] sm:$0xf] %vm864_vm4, %v852_v29  ;;  %866 = vst.msk [vmem:[#allocation2 + $0x4] sm:$0xf] %vm864_vm4, %v853_v30  ;;  %v580_v37 = vcombine.low %v433_v58, %v439_v26  ;;  %v581_v38 = vcombine.high %v433_v58, %v439_v26  ;;  %v596_v39 = vcombine.low %v436_v61, %v442_v27 }
 0x1d8   : > { %867 = vst.msk [vmem:[#allocation2 + $0x8] sm:$0xf] %vm864_vm4, %v854_v31  ;;  %868 = vst.msk [vmem:[#allocation2 + $0xc] sm:$0xf] %vm864_vm4, %v855_v32  ;;  %v597_v40 = vcombine.high %v436_v61, %v442_v27  ;;  %v728_v41 = vcombine.low %v663_v33, %v679_v34  ;;  %v729_v42 = vcombine.high %v663_v33, %v679_v34 }
 0x1d9   : > { %v760_v43 = vcombine.low %v695_v35, %v711_v36  ;;  %v761_v44 = vcombine.high %v695_v35, %v711_v36  ;;  %v588_v45 = vrot.slane %v580_v37, %v2644_v21  ;;  %v595_v46 = vrot.slane %v581_v38, %v2644_v21 }
 0x1da   : > { %v604_v47 = vrot.slane %v596_v39, %v2644_v21  ;;  %v611_v48 = vrot.slane %v597_v40, %v2644_v21  ;;  %v736_v49 = vrot.slane %v728_v41, %v2647_v28  ;;  %v743_v50 = vrot.slane %v729_v42, %v2647_v28 }
 0x1db   : > { %v768_v51 = vrot.slane %v760_v43, %v2647_v28  ;;  %v775_v52 = vrot.slane %v761_v44, %v2647_v28 }
 0x1dc   : > { %v612_v53 = vcombine.low %v588_v45, %v604_v47  ;;  %v613_v54 = vcombine.high %v588_v45, %v604_v47  ;;  %v628_v55 = vcombine.low %v595_v46, %v611_v48  ;;  %v629_v56 = vcombine.high %v595_v46, %v611_v48 }
 0x1dd   : > { %v780_v57 = vcombine.low %v736_v49, %v768_v51  ;;  %v781_v58 = vcombine.high %v736_v49, %v768_v51  ;;  %v782_v59 = vcombine.low %v743_v50, %v775_v52  ;;  %v783_v60 = vcombine.high %v743_v50, %v775_v52 }
 0x1de   : > { %v620_v61 = vrot.slane %v612_v53, %v2647_v28  ;;  %v627_v62 = vrot.slane %v613_v54, %v2647_v28  ;;  %v636_v63 = vrot.slane %v628_v55, %v2647_v28  ;;  %v643_v1 = vrot.slane %v629_v56, %v2647_v28  ;;  %v2693_v2 = vld [vmem:[#allocation2] sm:$0xf]  ;;  %v2695_v3 = vld [vmem:[#allocation2 + $0x4] sm:$0xf] }
 0x1df   : > { %v2697_v4 = vld [vmem:[#allocation2 + $0x8] sm:$0xf]  ;;  %v856_v5 = vpack.c.bf16 %v780_v57, %v780_v57  ;;  %v857_v6 = vpack.c.bf16 %v781_v58, %v781_v58  ;;  %v858_v7 = vpack.c.bf16 %v782_v59, %v782_v59  ;;  %v859_v8 = vpack.c.bf16 %v783_v60, %v783_v60  ;;  %v2699_v9 = vld [vmem:[#allocation2 + $0xc] sm:$0xf] }
 0x1e0   : > { %v784_v10 = vcombine.low %v620_v61, %v627_v62  ;;  %v1890_v11 = vcombine.high %v620_v61, %v627_v62  ;;  %v800_v12 = vcombine.low %v636_v63, %v643_v1  ;;  %v1891_v14 = vcombine.high %v636_v63, %v643_v1 }
 0x1e1   : > { %869 = vst.msk [vmem:[#allocation2 + $0x10] sm:$0xf] %vm864_vm4, %v856_v5  ;;  %870 = vst.msk [vmem:[#allocation2 + $0x14] sm:$0xf] %vm864_vm4, %v857_v6 }
 0x1e2   : > { %871 = vst.msk [vmem:[#allocation2 + $0x18] sm:$0xf] %vm864_vm4, %v858_v7  ;;  %872 = vst.msk [vmem:[#allocation2 + $0x1c] sm:$0xf] %vm864_vm4, %v859_v8  ;;  %v791_v15 = vrot.slane %v784_v10, %v2644_v21  ;;  %v799_v16 = vrot.slane %v1890_v11, %v2644_v21  ;;  %v807_v18 = vrot.slane %v800_v12, %v2644_v21 }
 0x1e3   : > { %v815_v19 = vrot.slane %v1891_v14, %v2644_v21 }
 0x1e4   : > { %v816_v20 = vcombine.low %v791_v15, %v799_v16  ;;  %v817_v22 = vcombine.high %v791_v15, %v799_v16 }
 0x1e5   : > { %v832_v23 = vcombine.low %v807_v18, %v815_v19  ;;  %v833_v24 = vcombine.high %v807_v18, %v815_v19 }
 0x1e6   : > { %v824_v25 = vrot.slane %v816_v20, %v2647_v28  ;;  %v831_v26 = vrot.slane %v817_v22, %v2647_v28 }
 0x1e7   : > { %v840_v27 = vrot.slane %v832_v23, %v2647_v28  ;;  %v847_v29 = vrot.slane %v833_v24, %v2647_v28 }
 0x1e9   : > { %v848_v30 = vcombine.low %v824_v25, %v840_v27  ;;  %v849_v31 = vcombine.high %v824_v25, %v840_v27  ;;  %v850_v32 = vcombine.low %v831_v26, %v847_v29  ;;  %v851_v33 = vcombine.high %v831_v26, %v847_v29 }
 0x1eb   : > { %v860_v34 = vpack.c.bf16 %v848_v30, %v848_v30  ;;  %v861_v35 = vpack.c.bf16 %v849_v31, %v849_v31  ;;  %v862_v36 = vpack.c.bf16 %v850_v32, %v850_v32  ;;  %v863_v37 = vpack.c.bf16 %v851_v33, %v851_v33 }
 0x1ed   : > { %873 = vst.msk [vmem:[#allocation2 + $0x20] sm:$0xf] %vm864_vm4, %v860_v34  ;;  %874 = vst.msk [vmem:[#allocation2 + $0x24] sm:$0xf] %vm864_vm4, %v861_v35 }
 0x1ee   : > { %875 = vst.msk [vmem:[#allocation2 + $0x28] sm:$0xf] %vm864_vm4, %v862_v36  ;;  %876 = vst.msk [vmem:[#allocation2 + $0x2c] sm:$0xf] %vm864_vm4, %v863_v37 }
 0x1ef LB: >> { %v2362_v38 = vmov 0.0   ;;  %s1892_s14 = sshll.u32 %s2339_s13, 3  ;;  %vm2363_vm5 = vmmov 0   ;;  %v1113_v47 = vand.u32 127, %v449_v13  ;;  %v2364_v16 = vmov 0   ;;  %v1121_v18 = vld [vmem:[#allocation3] sm:$0xff]  ;;  %s2339_s13 = sphi %s2721_s13, %s904_s13  }
 0x1f0   : >> { %1953 = vmatprep.subr.bf16.mxu0 %v2362_v38  ;;  %1959 = vmatprep.subr.bf16.mxu1 %v2362_v38  ;;  %s908_s17 = sshra.s32 %s1892_s14, 3  ;;  %v1114_v48 = vstv %s1892_s14  ;;  %v2790_v22 = vld [vmem:[#allocation3 + $0x8] sm:$0xff]  ;;  %v1123_v27 = vld [vmem:[#allocation3 + $0x10] sm:$0xff]  ;;  %v2801_v32 = vld [vmem:[#allocation3 + $0x18] sm:$0xff]  ;;  %vm1248_vm7 = vcmask 1043456   ;;  %s904_s13 = sadd.s32 1, %s2339_s13  }
 0x1f1   : >> { %1955 = vmatprep.mubr.msk.bf16.mxu0 %vm2363_vm5, %v2362_v38  ;;  %1961 = vmatprep.mubr.msk.bf16.mxu1 %vm2363_vm5, %v2362_v38  ;;  %s1893_s15 = sshll.u32 %s908_s17, 2  ;;  %v1115_v49 = vadd.s32 %v1114_v48, %v1113_v47  ;;  %p903_p8 = scmp.ge.s32.totalorder %s904_s13, 1 }
 0x1f2   : >> { %s2735_s24 = scalar_lea.vmem [#allocation2], %s1893_s15  ;;  %2127 = vset.pattern.permute.xlu0 %v2364_v16  ;;  %2128 = vset.pattern.permute.xlu1 %v2364_v16  ;;  %s2366_s12 = smov (%p903_p8), 16   ;;  %vm1627_vm8 = vcmask (%p903_p8), 130048   ;;  %vm1629_vm9 = vcmask (%p903_p8), 195584   ;;  %vm1735_vm10 = vcmask (%p903_p8), 257024  }
 0x1f3   : >> { %vm1116_vm6 = vcmp.le.s32.totalorder %v1115_v49, %v2641_v17  ;;  %s2367_s23 = smov (%p903_p8), 8   ;;  %s2368_s10 = smov (%p903_p8), 24  }
 0x1f4   : > { %s1920_s14 = sshll.u32 (%p903_p8), %s2327_s27, 6  ;;  %s1752_s17 = sshll.u32 (%p903_p8), %s2719_s11, 4  ;;  %s2899_s17 = int_to_ptr.vmem [resolvable:$true] %s1752_s17 }
 0x1f5   : >> { %v1894_v39 = vld [vmem:[%s2735_s24 + $0x10] sm:$0xf]  ;;  %v1895_v40 = vld [vmem:[%s2735_s24 + $0x14] sm:$0xf]  ;;  %v1896_v43 = vld [vmem:[%s2735_s24 + $0x18] sm:$0xf] }
 0x1f6   : >> { %v928_v41 = vsel %vm895_vm1, %v1894_v39, 0  ;;  %v974_v42 = vsel %vm895_vm1, %v1895_v40, 0  ;;  %v1897_v44 = vld [vmem:[%s2735_s24 + $0x1c] sm:$0xf]  ;;  %v1020_v45 = vsel %vm895_vm1, %v1896_v43, 0  ;;  %p2973_p1 = scmp.ne.s32.totalorder (%p903_p8), %s2969_s16, 0 }
 0x1f7   : >> { %1954 = vmatpush3.bf16.xpose.msra.mxu0 %v928_v41  ;;  %1960 = vmatpush3.bf16.xpose.msra.mxu1 %v974_v42  ;;  %v1066_v46 = vsel %vm895_vm1, %v1897_v44, 0  ;;  %v1899_v37 = vld [vmem:[%s2735_s24 + $0x20] sm:$0xf]  ;;  %v1900_v41 = vld [vmem:[%s2735_s24 + $0x24] sm:$0xf]  ;;  %s2369_s27 = smov (%p903_p8), [#allocation12]  }
 0x1f8   : >> { %1965 = vmatprep.subr.bf16.mxu0 %v2362_v38  ;;  %1971 = vmatprep.subr.bf16.mxu1 %v2362_v38  ;;  %v1250_v39 = vsel %vm1248_vm7, %v1899_v37, 0  ;;  %v1296_v42 = vsel %vm1248_vm7, %v1900_v41, 0  ;;  %s2249_s22 = sshll.u32 (%p903_p8), %s2369_s27, 4  ;;  %s2250_s22 = int_to_ptr.vmem [resolvable:$false] %s2249_s22 }
 0x1f9   : > { %s2251_s18 = scalar_lea.vmem (%p903_p8), %s2250_s22, 128  ;;  %p2252_p5 = scmp.lt.s32.totalorder (%p903_p8), %s2899_s17, %s2250_s22 }
 0x1fe   : >> { %1956 = vmatmul.mubr.msk.bf16.vlgmr.msra.gmra.mrb[0].mxu0 %vm895_vm1, %v2693_v2  ;;  %1962 = vmatmul.mubr.msk.bf16.vlgmr.msra.gmra.mrb[0].mxu1 %vm895_vm1, %v2695_v3 }
 0x1ff   : >> { %1966 = vmatpush3.bf16.xpose.msra.mxu0 %v1020_v45  ;;  %1972 = vmatpush3.bf16.xpose.msra.mxu1 %v1066_v46 }
 0x200   : >> { %1967 = vmatprep.mubr.msk.bf16.mxu0 %vm2363_vm5, %v2362_v38  ;;  %1973 = vmatprep.mubr.msk.bf16.mxu1 %vm2363_vm5, %v2362_v38 }
 0x201   : >> { %1977 = vmatprep.subr.bf16.mxu0 %v2362_v38  ;;  %1983 = vmatprep.subr.bf16.mxu1 %v2362_v38 }
 0x206   : >> { %1968 = vmatmul.mubr.msk.bf16.vlgmr.msra.gmra.mrb[4].mxu0 %vm895_vm1, %v2697_v4  ;;  %1974 = vmatmul.mubr.msk.bf16.vlgmr.msra.gmra.mrb[4].mxu1 %vm895_vm1, %v2699_v9 }
 0x207   : >> { %1979 = vmatprep.mubr.msk.bf16.mxu0 %vm2363_vm5, %v2362_v38  ;;  %1985 = vmatprep.mubr.msk.bf16.mxu1 %vm2363_vm5, %v2362_v38 }
 0x208   : >> { %1978 = vmatpush3.bf16.msra.mxu0 %v1250_v39  ;;  %1984 = vmatpush3.bf16.msra.mxu1 %v1296_v42  ;;  %v1214_v42 = vld [vmem:[#allocation5 + $0x8] sm:$0xff] }
 0x209   : >> { %1989 = vmatprep.subr.bf16.mxu0 %v2362_v38  ;;  %1995 = vmatprep.subr.bf16.mxu1 %v2362_v38 }
 0x2d1   : >> { %v964_v50 = vpop.f32.mrb[0].mxu0  ;;  %v1010_v51 = vpop.f32.mrb[0].mxu1 }
 0x2d2   : >> { %v2771_v52 = vsel %vm1116_vm6, %v964_v50, -1e+30  ;;  %v1957_v53 = vpop.f32.mrb[1].mxu0  ;;  %v2775_v54 = vsel %vm1116_vm6, %v1010_v51, -1e+30  ;;  %v1963_v55 = vpop.f32.mrb[1].mxu1 }
 0x2d3   : >> { %v967_v56 = vpop.f32.mrb[2].mxu0  ;;  %v1125_v57 = vsel %vm895_vm1, %v2771_v52, -inf  ;;  %v1013_v58 = vpop.f32.mrb[2].mxu1  ;;  %v1128_v61 = vsel %vm895_vm1, %v2775_v54, -inf }
 0x2d4   : >> { %1126 = vmax.xlane.f32.xlu0 %v1125_v57  ;;  %v1958_v59 = vpop.f32.mrb[3].mxu0  ;;  %v1964_v60 = vpop.f32.mrb[3].mxu1  ;;  %v1901_v56 = vld [vmem:[%s2735_s24 + $0x28] sm:$0xf] }
 0x2d5   : >> { %v1342_v60 = vsel %vm1248_vm7, %v1901_v56, 0 }
 0x2d8   : >> { %1129 = vmax.xlane.f32.xlu0 %v1128_v61 }
 0x2d9   : >> { %v1056_v62 = vpop.f32.mrb[4].mxu0  ;;  %v1102_v63 = vpop.f32.mrb[4].mxu1 }
 0x2da   : >> { %v1119_v1 = vsel %vm1116_vm6, %v1056_v62, -1e+30  ;;  %v1969_v5 = vpop.f32.mrb[5].mxu0  ;;  %v2785_v6 = vsel %vm1116_vm6, %v1102_v63, -1e+30  ;;  %v1975_v7 = vpop.f32.mrb[5].mxu1 }
 0x2db   : >> { %v1059_v8 = vpop.f32.mrb[6].mxu0  ;;  %v1131_v10 = vsel %vm895_vm1, %v1119_v1, -inf  ;;  %v1105_v11 = vpop.f32.mrb[6].mxu1  ;;  %v1134_v15 = vsel %vm895_vm1, %v2785_v6, -inf }
 0x2dc   : >> { %1132 = vmax.xlane.f32.xlu1 %v1131_v10  ;;  %v1970_v12 = vpop.f32.mrb[7].mxu0  ;;  %v1976_v14 = vpop.f32.mrb[7].mxu1 }
 0x2e0   : >> { %1135 = vmax.xlane.f32.xlu1 %v1134_v15 }
 0x361   : >> { %v1127_v19 = vpop.xlane.xlu0 %1126 }
 0x362   : >> { %v1137_v20 = vmax.f32 %v1121_v18, %v1127_v19 }
 0x364   : >> { %v1141_v23 = vsub.f32 %v1121_v18, %v1137_v20  ;;  %1438 = vst.msk [vmem:[#allocation3] sm:$0xff] %vm886_vm0, %v1137_v20  ;;  %1155 = vperm.xlu0 %2127, %v1137_v20   ;;  %v1185_v20 = vld [vmem:[#allocation4] sm:$0xff] }
 0x365   : >> { %v1130_v24 = vpop.xlane.xlu0 %1129 }
 0x366   : >> { %v1145_v25 = vmul.f32 1.442695, %v1141_v23  ;;  %v2794_v26 = vmax.f32 %v2790_v22, %v1130_v24  ;;  %v1186_v24 = vld [vmem:[#allocation4 + $0x8] sm:$0xff] }
 0x368   : >> { %2129 = vpow2.f32 %v1145_v25  ;;  %v1142_v29 = vsub.f32 %v2790_v22, %v2794_v26  ;;  %1439 = vst.msk [vmem:[#allocation3 + $0x8] sm:$0xff] %vm886_vm0, %v2794_v26  ;;  %1160 = vperm.xlu1 %2128, %v2794_v26  }
 0x369   : >> { %v1133_v30 = vpop.xlane.xlu1 %1132 }
 0x36a   : >> { %v1139_v31 = vmax.f32 %v1123_v27, %v1133_v30  ;;  %v1147_v10 = vmul.f32 1.442695, %v1142_v29 }
 0x36c   : >> { %v1143_v33 = vsub.f32 %v1123_v27, %v1139_v31  ;;  %1440 = vst.msk [vmem:[#allocation3 + $0x10] sm:$0xff] %vm886_vm0, %v1139_v31  ;;  %1165 = vperm.xlu1 %2128, %v1139_v31   ;;  %v1187_v31 = vld [vmem:[#allocation4 + $0x10] sm:$0xff] }
 0x36d   : >> { %v1136_v34 = vpop.xlane.xlu1 %1135 }
 0x36e   : >> { %v2805_v35 = vmax.f32 %v2801_v32, %v1136_v34  ;;  %v1149_v62 = vmul.f32 1.442695, %v1143_v33  ;;  %v1188_v34 = vld [vmem:[#allocation4 + $0x18] sm:$0xff] }
 0x370   : >> { %v1144_v36 = vsub.f32 %v2801_v32, %v2805_v35  ;;  %1441 = vst.msk [vmem:[#allocation3 + $0x18] sm:$0xff] %vm886_vm0, %v2805_v35  ;;  %1170 = vperm.xlu1 %2128, %v2805_v35  }
 0x372   : >> { %v2814_v40 = vpop.eup %2129  ;;  %v1151_v16 = vmul.f32 1.442695, %v1144_v36 }
 0x373   : >> { %v1189_v22 = vmul.f32 %v2814_v40, %v1185_v20 }
 0x374   : >> { %1219 = vperm.xlu1 %2128, %v2814_v40   ;;  %v1213_v40 = vld [vmem:[#allocation5] sm:$0xff] }
 0x3e3   : >> { %v1156_v43 = vpop.permute.xlu0 %1155 }
 0x3e4   : >> { %v1173_v44 = vsub.f32 %v2771_v52, %v1156_v43 }
 0x3e6   : >> { %v1177_v45 = vmul.f32 1.442695, %v1173_v44 }
 0x3e7   : >> { %v1161_v46 = vpop.permute.xlu1 %1160 }
 0x3e8   : >> { %2131 = vpow2.f32 %v1177_v45  ;;  %v1174_v47 = vsub.f32 %v2775_v54, %v1161_v46  ;;  %v1902_v54 = vld [vmem:[%s2735_s24 + $0x2c] sm:$0xf] }
 0x3e9   : >> { %v1388_v5 = vsel %vm1248_vm7, %v1902_v54, 0 }
 0x3ea   : >> { %v1179_v48 = vmul.f32 1.442695, %v1174_v47 }
 0x3eb   : >> { %v1166_v49 = vpop.permute.xlu1 %1165 }
 0x3ec   : >> { %2133 = vpow2.f32 %v1179_v48  ;;  %v1175_v50 = vsub.f32 %v1119_v1, %v1166_v49 }
 0x3ee   : >> { %v1181_v51 = vmul.f32 1.442695, %v1175_v50  ;;  %v1215_v50 = vld [vmem:[#allocation5 + $0x10] sm:$0xff] }
 0x3ef   : >> { %v1171_v53 = vpop.permute.xlu1 %1170 }
 0x3f0   : >> { %2135 = vpow2.f32 %v1181_v51  ;;  %v1176_v55 = vsub.f32 %v2785_v6, %v1171_v53 }
 0x3f2   : >> { %v2132_v57 = vpop.eup %2131  ;;  %v1183_v58 = vmul.f32 1.442695, %v1176_v55 }
 0x3f3   : >> { %v1193_v52 = vsel %vm895_vm1, %v2132_v57, 0.0  ;;  %v1241_v59 = vpack.c.bf16 %v2132_v57, %v2132_v57  ;;  %v1220_v19 = vpop.permute.xlu1 %1219 }
 0x3f4   : >> { %2137 = vpow2.f32 %v1183_v58  ;;  %1194 = vadd.xlane.f32.xlu1 %v1193_v52  ;;  %v1237_v41 = vmul.f32 %v1220_v19, %v1213_v40  ;;  %v1216_v52 = vld [vmem:[#allocation5 + $0x18] sm:$0xff] }
 0x3f5   : >> { %1980 = vmatmul.mubr.msk.bf16.vlgmr.msra.gmra.mrb[8].mxu0 %vm895_vm1, %v1241_v59  ;;  %2139 = vpow2.f32 %v1149_v62 }
 0x3f6   : >> { %v2134_v61 = vpop.eup %2133  ;;  %1990 = vmatpush3.bf16.msra.mxu0 %v1342_v60  ;;  %1991 = vmatprep.mubr.msk.bf16.mxu0 %vm2363_vm5, %v2362_v38  ;;  %2141 = vpow2.f32 %v1147_v10 }
 0x3f7   : >> { %v1196_v63 = vsel %vm895_vm1, %v2134_v61, 0.0  ;;  %v1242_v1 = vpack.c.bf16 %v2134_v61, %v2134_v61  ;;  %2143 = vpow2.f32 %v1151_v16  ;;  %2001 = vmatprep.subr.bf16.mxu0 (%p903_p8), %v2346_v0 }
 0x3f8   : >> { %1197 = vadd.xlane.f32.xlu0 %v1196_v63 }
 0x3f9   : >> { %1986 = vmatmul.mubr.msk.bf16.vlgmr.msra.gmra.mrb[8].mxu1 %vm895_vm1, %v1242_v1 }
 0x3fa   : >> { %v2136_v6 = vpop.eup %2135  ;;  %1996 = vmatpush3.bf16.msra.mxu1 %v1388_v5  ;;  %1997 = vmatprep.mubr.msk.bf16.mxu1 %vm2363_vm5, %v2362_v38 }
 0x3fb   : >> { %v1243_v7 = vpack.c.bf16 %v2136_v6, %v2136_v6  ;;  %v1199_v15 = vsel %vm895_vm1, %v2136_v6, 0.0 }
 0x3fd   : >> { %1992 = vmatmul.mubr.msk.bf16.vlgmr.msra.gmra.mrb[12].mxu0 %vm895_vm1, %v1243_v7 }
 0x3fe   : >> { %v2138_v8 = vpop.eup %2137  ;;  %2005 = vmatprep.mubr.msk.bf16.mxu0 (%p903_p8), %vm2348_vm2, %v2346_v0 }
 0x3ff   : >> { %v1244_v11 = vpack.c.bf16 %v2138_v8, %v2138_v8  ;;  %v2140_v12 = vpop.eup %2139  ;;  %v1202_v38 = vsel %vm895_vm1, %v2138_v8, 0.0 }
 0x400   : >> { %v2142_v14 = vpop.eup %2141  ;;  %v1191_v32 = vmul.f32 %v2140_v12, %v1187_v31 }
 0x401   : >> { %1998 = vmatmul.mubr.msk.bf16.vlgmr.msra.gmra.mrb[12].mxu1 %vm895_vm1, %v1244_v11  ;;  %v2144_v18 = vpop.eup %2143  ;;  %v1190_v26 = vmul.f32 %v2142_v14, %v1186_v24 }
 0x402   : >> { %v1192_v36 = vmul.f32 %v2144_v18, %v1188_v34 }
 0x405   : >> { %1229 = vperm.xlu1 %2128, %v2140_v12  }
 0x40e   : >> { %1224 = vperm.xlu0 %2127, %v2142_v14  }
 0x429   : >> { %1200 = vadd.xlane.f32.xlu1 %v1199_v15  ;;  %v2365_v15 = vmov (%p903_p8), 0  }
 0x42a   : > { %2145 = vset.pattern.permute.xlu0 (%p903_p8), %v2365_v15 }
 0x42d   : >> { %1203 = vadd.xlane.f32.xlu1 %v1202_v38 }
 0x43e   : >> { %1234 = vperm.xlu1 %2128, %v2144_v18  }
 0x442   : > { %2146 = vset.pattern.permute.xlu1 (%p903_p8), %v2365_v15  ;;  %v1913_v15 = vld [vmem:[%s2951_s4] ss:$0 sm:$0xff] (%p903_p8) }
 0x481   : >> { %v1195_v23 = vpop.xlane.xlu1 %1194 }
 0x482   : >> { %v1205_v25 = vadd.f32 %v1195_v23, %v1189_v22 }
 0x484   : >> { %1209 = vst.msk [vmem:[#allocation4] sm:$0xff] %vm886_vm0, %v1205_v25 }
 0x485   : >> { %v1198_v27 = vpop.xlane.xlu0 %1197  ;;  %v1230_v30 = vpop.permute.xlu1 %1229 }
 0x486   : >> { %v1206_v29 = vadd.f32 %v1198_v27, %v1190_v26  ;;  %v1239_v57 = vmul.f32 %v1230_v30, %v1215_v50 }
 0x488   : >> { %1210 = vst.msk [vmem:[#allocation4 + $0x8] sm:$0xff] %vm886_vm0, %v1206_v29 }
 0x48b   : > { %v1446_v12 = vld [vmem:[#allocation4] sm:$0xff] (%p903_p8) }
 0x48d   : >> { %v1225_v43 = vpop.permute.xlu0 %1224 }
 0x48e   : >> { %v1238_v48 = vmul.f32 %v1225_v43, %v1214_v42 }
 0x48f   : > { %v1447_v38 = vld [vmem:[#allocation4 + $0x8] sm:$0xff] (%p903_p8) }
 0x4b6   : >> { %v1201_v33 = vpop.xlane.xlu1 %1200 }
 0x4b7   : >> { %v1207_v35 = vadd.f32 %v1201_v33, %v1191_v32 }
 0x4b9   : >> { %1211 = vst.msk [vmem:[#allocation4 + $0x10] sm:$0xff] %vm886_vm0, %v1207_v35 }
 0x4ba   : >> { %v1204_v37 = vpop.xlane.xlu1 %1203 }
 0x4bb   : >> { %v1208_v39 = vadd.f32 %v1204_v37, %v1192_v36  ;;  %v2147_v37 = vld [vmem:[#allocation11] sm:$0xff] (%p903_p8)  }
 0x4bc   : > { %2002 = vmatpush3.bf16.msra.mxu0 (%p903_p8), %v2147_v37 }
 0x4bd   : >> { %1212 = vst.msk [vmem:[#allocation4 + $0x18] sm:$0xff] %vm886_vm0, %v1208_v39  ;;  %2003 = vmatprep.subr.bf16.mxu0 (%p903_p8), %v2346_v0 }
 0x4be   : >> { %v1235_v59 = vpop.permute.xlu1 %1234 }
 0x4bf   : >> { %v1240_v63 = vmul.f32 %v1235_v59, %v1216_v52 }
 0x4c0   : > { %v1448_v11 = vld [vmem:[#allocation4 + $0x10] sm:$0xff] (%p903_p8) }
 0x4c1   : > { %2149 = vrcp.f32 (%p903_p8), %v1448_v11 }
 0x4c2   : > { %2151 = vrcp.f32 (%p903_p8), %v1446_v12 }
 0x4c4   : > { %v1449_v14 = vld [vmem:[#allocation4 + $0x18] sm:$0xff] (%p903_p8) }
 0x4c5   : > { %2153 = vrcp.f32 (%p903_p8), %v1449_v14  ;;  %v1701_v14 = vld [vmem:[%s2601_s8] sm:$0xf] (%p903_p8) }
 0x4c6   : > { %2155 = vrcp.f32 (%p903_p8), %v1447_v38  ;;  %v1702_v38 = vunpack.c.l.bf16 (%p903_p8), %v1701_v14 }
 0x4c8   : >> { %v1286_v44 = vpop.f32.mrb[8].mxu0 }
 0x4c9   : >> { %v1430_v45 = vadd.f32 %v1286_v44, %v1237_v41  ;;  %v1981_v46 = vpop.f32.mrb[9].mxu0 }
 0x4ca   : >> { %v1289_v47 = vpop.f32.mrb[10].mxu0 }
 0x4cb   : >> { %1434 = vst.msk [vmem:[#allocation5] sm:$0xff] %vm895_vm1, %v1430_v45  ;;  %v1982_v49 = vpop.f32.mrb[11].mxu0  ;;  %v2150_v16 = vpop.eup (%p903_p8), %2149  ;;  %v2148_v47 = vld [vmem:[#allocation11 + $0x8] sm:$0xff] (%p903_p8)  }
 0x4cc   : >> { %v1332_v51 = vpop.f32.mrb[8].mxu1  ;;  %v2152_v18 = vpop.eup (%p903_p8), %2151  ;;  %1466 = vperm.xlu1 (%p903_p8), %2146, %v2150_v16   ;;  %2004 = vmatpush3.bf16.msra.mxu0 (%p903_p8), %v2148_v47 }
 0x4cd   : >> { %v1431_v53 = vadd.f32 %v1332_v51, %v1238_v48  ;;  %v1987_v55 = vpop.f32.mrb[9].mxu1  ;;  %1456 = vperm.xlu0 (%p903_p8), %2145, %v2152_v18  }
 0x4ce   : >> { %v1335_v56 = vpop.f32.mrb[10].mxu1 }
 0x4cf   : >> { %1435 = vst.msk [vmem:[#allocation5 + $0x8] sm:$0xff] %vm895_vm1, %v1431_v53  ;;  %v1988_v58 = vpop.f32.mrb[11].mxu1  ;;  %v2154_v19 = vpop.eup (%p903_p8), %2153 }
 0x4d0   : >> { %v1378_v60 = vpop.f32.mrb[12].mxu0  ;;  %v2156_v13 = vpop.eup (%p903_p8), %2155  ;;  %1471 = vperm.xlu1 (%p903_p8), %2146, %v2154_v19  }
 0x4d1   : >> { %v1432_v54 = vadd.f32 %v1378_v60, %v1239_v57  ;;  %v1993_v61 = vpop.f32.mrb[13].mxu0  ;;  %906 = sbr.rel (!%p903_p8) target bundleno = 495 (0x1ef), region = 116  ;;  %1461 = vperm.xlu0 (%p903_p8), %2145, %v2156_v13  }
 0x4d2   : >> { %v1381_v62 = vpop.f32.mrb[14].mxu0  ;;  %v1442_v2 = vld [vmem:[#allocation5] sm:$0xff] (%p903_p8) }
 0x4d3   : >> { %1436 = vst.msk [vmem:[#allocation5 + $0x10] sm:$0xff] %vm895_vm1, %v1432_v54  ;;  %v1994_v1 = vpop.f32.mrb[15].mxu0 }
 0x4d4   : >> { %v1424_v5 = vpop.f32.mrb[12].mxu1 }
 0x4d5   : >> { %v1433_v6 = vadd.f32 %v1424_v5, %v1240_v63  ;;  %v1999_v7 = vpop.f32.mrb[13].mxu1 }
 0x4d6   : >> { %v1427_v8 = vpop.f32.mrb[14].mxu1  ;;  %v1443_v23 = vld [vmem:[#allocation5 + $0x8] sm:$0xff] (%p903_p8) }
 0x4d7   : >> { %1437 = vst.msk [vmem:[#allocation5 + $0x18] sm:$0xff] %vm895_vm1, %v1433_v6  ;;  %v2000_v10 = vpop.f32.mrb[15].mxu1 }
 0x4da   : > { %v1444_v17 = vld [vmem:[#allocation5 + $0x10] sm:$0xff] }
 0x4de   : > { %v1445_v22 = vld [vmem:[#allocation5 + $0x18] sm:$0xff] }
 0x54b   : > { %v1467_v3 = vpop.permute.xlu1 %1466 }
 0x54c   : > { %v1457_v4 = vpop.permute.xlu0 %1456  ;;  %v1476_v9 = vmul.f32 %v1467_v3, %v1444_v17 }
 0x54d   : > { %v1474_v20 = vmul.f32 %v1457_v4, %v1442_v2 }
 0x54f   : > { %v1472_v24 = vpop.permute.xlu1 %1471  ;;  %v1478_v27 = vcombine.low %v1474_v20, %v1476_v9  ;;  %v1479_v29 = vcombine.high %v1474_v20, %v1476_v9 }
 0x550   : > { %v1477_v25 = vmul.f32 %v1472_v24, %v1445_v22  ;;  %v1462_v26 = vpop.permute.xlu0 %1461 }
 0x551   : > { %v1475_v30 = vmul.f32 %v1462_v26, %v1443_v23  ;;  %v1486_v33 = vrot.slane %v1478_v27, %v2644_v21  ;;  %v1493_v34 = vrot.slane %v1479_v29, %v2644_v21  ;;  %v1917_v29 = vld [vmem:[%s2952_s5] ss:$0 sm:$0xff] }
 0x553   : > { %v1494_v31 = vcombine.low %v1475_v30, %v1477_v25  ;;  %v1495_v32 = vcombine.high %v1475_v30, %v1477_v25 }
 0x555   : > { %v1502_v35 = vrot.slane %v1494_v31, %v2644_v21  ;;  %v1509_v36 = vrot.slane %v1495_v32, %v2644_v21  ;;  %v1918_v31 = vld [vmem:[%s2953_s6] ss:$0 sm:$0xff] }
 0x557   : > { %v1510_v39 = vcombine.low %v1486_v33, %v1502_v35  ;;  %v1511_v40 = vcombine.high %v1486_v33, %v1502_v35  ;;  %v1526_v41 = vcombine.low %v1493_v34, %v1509_v36  ;;  %v1527_v42 = vcombine.high %v1493_v34, %v1509_v36 }
 0x559   : > { %v1518_v43 = vrot.slane %v1510_v39, %v2647_v28  ;;  %v1525_v44 = vrot.slane %v1511_v40, %v2647_v28  ;;  %v1534_v45 = vrot.slane %v1526_v41, %v2647_v28  ;;  %v1541_v46 = vrot.slane %v1527_v42, %v2647_v28 }
 0x55b   : > { %v1546_v48 = vcombine.low %v1518_v43, %v1525_v44  ;;  %v1911_v49 = vcombine.high %v1518_v43, %v1525_v44  ;;  %v1562_v50 = vcombine.low %v1534_v45, %v1541_v46  ;;  %v1912_v51 = vcombine.high %v1534_v45, %v1541_v46 }
 0x55d   : > { %v1553_v53 = vrot.slane %v1546_v48, %v2644_v21  ;;  %v1561_v55 = vrot.slane %v1911_v49, %v2644_v21  ;;  %v1569_v56 = vrot.slane %v1562_v50, %v2644_v21  ;;  %v1577_v57 = vrot.slane %v1912_v51, %v2644_v21 }
 0x55f   : > { %v1579_v58 = vcombine.high %v1553_v53, %v1561_v55  ;;  %v1595_v52 = vcombine.high %v1569_v56, %v1577_v57  ;;  %v1578_v59 = vcombine.low %v1553_v53, %v1561_v55  ;;  %v1594_v60 = vcombine.low %v1569_v56, %v1577_v57 }
 0x561   : > { %v1593_v0 = vrot.slane %v1579_v58, %v2647_v28  ;;  %v1609_v54 = vrot.slane %v1595_v52, %v2647_v28  ;;  %v1586_v61 = vrot.slane %v1578_v59, %v2647_v28  ;;  %v1602_v62 = vrot.slane %v1594_v60, %v2647_v28 }
 0x563   : > { %v1612_v63 = vcombine.low %v1593_v0, %v1609_v54  ;;  %v1611_v1 = vcombine.high %v1586_v61, %v1602_v62  ;;  %v1610_v5 = vcombine.low %v1586_v61, %v1602_v62  ;;  %v1613_v21 = vcombine.high %v1593_v0, %v1609_v54 }
 0x565   : > { %1619 = vrot.lane.b32.xlu1 %v1612_v63, %s2366_s12  ;;  %1615 = vrot.lane.b32.xlu0 %v1611_v1, %s2367_s23  ;;  %s2897_s12 = scalar_lea.hbm %s2954_s7, %s1920_s14  ;;  %s1738_s23 = scalar_lea.sflag [#allocation8], %s2595_s21 }
 0x569   : > { %1623 = vrot.lane.b32.xlu0 %v1613_v21, %s2368_s10  ;;  %s2245_s10 = scalar_lea.vmem %s2899_s17, 64 }
 0x56a   : > { %p2246_p12 = scmp.ne.s32.totalorder %s2899_s17, %s2245_s10  ;;  %p2253_p9 = scmp.lt.s32.totalorder %s2251_s18, %s2245_s10 }
 0x56c   : > { %p2247_p10 = pnand %p2246_p12, %p2973_p1  ;;  %p2254_p11 = por %p2253_p9, %p2252_p5 }
 0x56e   : > { %p2248_p3 = pneg %p2247_p10 }
 0x570   : > { %p2255_p0 = pnand %p2254_p11, %p2248_p3 }
 0x5d7   : > { %v1616_v6 = vpop.permute.xlu0 %1615  ;;  %v1620_v7 = vpop.permute.xlu1 %1619 }
 0x5d8   : > { %v1626_v8 = vsel %vm895_vm1, %v1610_v5, %v1616_v6 }
 0x5d9   : > { %v1628_v10 = vsel %vm1627_vm8, %v1626_v8, %v1620_v7 }
 0x5db   : > { %v1624_v11 = vpop.permute.xlu0 %1623 }
 0x5dc   : > { %v1630_v28 = vsel %vm1629_vm9, %v1628_v10, %v1624_v11 }
 0x5dd   : > { %v1631_v12 = vpack.c.bf16 %v1630_v28, %v1630_v28 }
 0x5df   : > { %2006 = vmatmul.mubr.msk.bf16.vlgmr.msra.gmra.mrb[0].mxu0 %vm366_vm3, %v1631_v12 }
 0x6b2   : > { %v1693_v16 = vpop.f32.mrb[0].mxu0 }
 0x6b3   : > { %v1694_v18 = vadd.f32 %v1913_v15, %v1693_v16  ;;  %v2007_v19 = vpop.f32.mrb[1].mxu0 }
 0x6b4   : > { %v1696_v13 = vpop.f32.mrb[2].mxu0 }
 0x6b5   : > { %v2008_v17 = vpop.f32.mrb[3].mxu0  ;;  %v1703_v2 = vadd.f32 %v1702_v38, %v1694_v18 }
 0x6b7   : > { %v1704_v3 = vsel %vm366_vm3, %v1703_v2, 0.0 }
 0x6b8   : > { %1705 = vadd.xlane.f32.xlu1 %v1704_v3 }
 0x745   : > { %v1706_v4 = vpop.xlane.xlu1 %1705 }
 0x746   : > { %v1708_v9 = vmul.f32 0.03125, %v1706_v4 }
 0x748   : > { %v1709_v20 = vsub.f32 %v1703_v2, %v1708_v9 }
 0x74a   : > { %v1710_v22 = vmul.f32 %v1709_v20, %v1709_v20 }
 0x74c   : > { %v1711_v23 = vsel %vm366_vm3, %v1710_v22, 0.0 }
 0x74d   : > { %1712 = vadd.xlane.f32.xlu0 %v1711_v23 }
 0x7da   : > { %v1713_v24 = vpop.xlane.xlu0 %1712 }
 0x7db   : > { %v1714_v25 = vmul.f32 0.03125, %v1713_v24 }
 0x7dd   : > { %v1715_v26 = vadd.f32 1e-05, %v1714_v25 }
 0x7df   : > { %2157 = vrsqrt.f32 %v1715_v26 }
 0x7e9   : > { %v2158_v27 = vpop.eup %2157 }
 0x7ea   : > { %v1717_v30 = vmul.f32 %v2158_v27, %v1709_v20 }
 0x7ec   : > { %v1725_v32 = vmul.f32 %v1917_v29, %v1717_v30 }
 0x7ee   : > { %v1733_v33 = vadd.f32 %v1918_v31, %v1725_v32 }
 0x7f0   : > { %v1734_v34 = vpack.c.bf16 %v1733_v33, %v1733_v33 }
 0x7f2   : > { %1736 = vst.msk [vmem:[%s2719_s11] sm:$0xf] %vm1735_vm10, %v1734_v34 }
 0x7f3   : > { %2258 = shalt.err (!%p2255_p0)
}
 0x7f4   : > { %s2259_s21 = scalar_lea.hbm %s2897_s12, 64  ;;  %s2263_s30 = scalar_lea.hbm %s2954_s7, 128 }
 0x7f5   : > { %p2260_p4 = scmp.ne.s32.totalorder %s2897_s12, %s2259_s21  ;;  %p2264_p7 = scmp.lt.u32.totalorder %s2897_s12, %s2954_s7 }
 0x7f6   : > { %p2265_p2 = scmp.lt.u32.totalorder %s2263_s30, %s2259_s21  ;;  %p2267_p12 = scmp.lt.u32.totalorder %s2259_s21, %s2897_s12 }
 0x7f7   : > { %p2261_p13 = pnand %p2260_p4, %p2973_p1 }
 0x7f8   : > { %p2266_p8 = por %p2265_p2, %p2264_p7 }
 0x7f9   : > { %p2262_p6 = pneg %p2261_p13 }
 0x7fa   : > { %p2268_p10 = por %p2267_p12, %p2266_p8 }
 0x7fc   : > { %p2269_p3 = pnand %p2268_p10, %p2262_p6 }
 0x7fe   : > { %2272 = shalt.err (!%p2269_p3)
}
 0x7ff   : > { %2019 = dma.vmem_to_hbm [thread:$0]  (%p2973_p1), %s2899_s17, 64, %s2897_s12, %s1738_s23  }
 0x800 PF: > { %s2974_s14 = sld [smem:[#allocation16_spill]]  ;;  %s2975_s15 = sld [smem:[#allocation17_spill]] }
 0x801   : > { %p2977_p9 = scmp.ge.s32.totalorder %s2335_s29, 2 }
 0x806   : > { %s1764_s24 = sand.u32 1, %s2974_s14   ;;  %p2976_p5 = scmp.ne.s32.totalorder %s2975_s15, 0 }
 0x807   : > { %s1765_s10 = scalar_lea.sflag [#allocation8], %s1764_s24 }
 0x808   : > { %p2033_p11 = pnand %p2977_p9, %p2976_p5 }
 0x80a   : > { %2310 = dma.done.wait (!%p2033_p11), %s1765_s10, 64  }
 0x80b   : > { %2312 = vsyncadd (!%p2033_p11), %s1765_s10, 4294967232  ;;  %s24_s29 = sadd.s32 1, %s2335_s29   ;;  %s2978_s24 = smov %s2319_s25 }
 0x80c   : > { %p21_p0 = scmp.ge.s32.totalorder %s24_s29, 4   ;;  %s2979_s25 = smov %s2323_s26 }
 0x80d   : > { %s2980_s26 = smov %s2552_s19  ;;  %s2981_s27 = smov %s2331_s28 }
 0x80e   : > { %s2982_s28 = smov %s2984_s20  ;;  %23 = sbr.rel (!%p21_p0) target bundleno = 7 (0x7), region = 127 }
 0x815   :  { %1770 = vsyncpa [#allocation7], 1 }
 0x816   :  { %1772 = vsyncpa [#allocation7 + $0x1], 1 }
 0x817   :  { %1773 = vsyncpa [#allocation10], 1 }
 0x818   :  { %1774 = vsyncpa [#allocation8], 1 }
 0x819   :  { %1776 = vsyncpa [#allocation8 + $0x1], 1 }

</bundles_post_ra>
